<compile_context>
chip_gen: v7x
topology: tpu7x:2x2x1
jax: 0.10.0
libtpu: 0.0.40
codegen_flags: <defaults>
</compile_context>

<pallas_src>
import functools

import jax
import jax.numpy as jnp
from jax import lax
from jax.experimental import pallas as pl
from jax.experimental.pallas import tpu as pltpu


# ---------------------------------------------------------------------------
# Fused UBlock Pallas kernel
# ---------------------------------------------------------------------------

def _conv2d_circ_relu(h, w_ref, b_ref, *, k, H, W, mxu_dtype):
    """Conv2d(k, padding='same', circular) + ReLU on a VMEM-resident tile.

    h:      (H, W, Cin)  f32 value (already in VMEM / vregs)
    w_ref:  (k*k, Cin, Cout) ref (mxu_dtype), tap-major layout
    b_ref:  (1, Cout) f32 ref
    returns (H, W, Cout) f32 value
    """
    Cout = w_ref.shape[-1]
    p = (k - 1) // 2

    # Circular pad along H (leading axis): cheap vreg-array concat.
    hp = jnp.concatenate([h[H - p:], h, h[:p]], axis=0) if p > 0 else h   # (H+2p, W, C)

    acc = jnp.zeros((H * W, Cout), jnp.float32)
    # Accumulate the k*k taps as shifted-view MXU matmuls (in-VMEM im2col).
    for dx in range(k):
        s = (p - dx) % W
        if s == 0:
            hx = hp
        else:
            # Circular shift along W: hx[:, x] = hp[:, (x + dx - p) mod W]
            hx = jnp.concatenate([hp[:, W - s:, :], hp[:, :W - s, :]], axis=1)
        for dy in range(k):
            tap = hx[dy:dy + H].reshape(H * W, -1)          # (H*W, Cin)
            acc = acc + jnp.dot(tap.astype(mxu_dtype), w_ref[dy * k + dx],
                                preferred_element_type=jnp.float32)
    acc = jnp.maximum(acc + b_ref[...], 0.0)                 # bias + ReLU in f32
    return acc.reshape(H, W, Cout)


def _make_ublock_kernel(*, k, depth, H, W, mxu_dtype):
    def kernel(e_ref, x_ref, *rest):
        # rest = (w_0, b_0, ..., w_{depth-1}, b_{depth-1}, o_ref)
        o_ref = rest[-1]
        layer_refs = rest[:-1]

        # x + emb(embedding)[:, :, None, None]  (channels-last inside kernel;
        # e_ref is (1, 1, Cin): broadcast in-kernel, never materialized in HBM)
        h = x_ref[0].astype(jnp.float32) + e_ref[0]          # (H, W, Cin)

        # Sequential([Conv2d(circular 'same') -> ReLU] * depth), all in VMEM.
        for i in range(depth):
            h = _conv2d_circ_relu(h, layer_refs[2 * i], layer_refs[2 * i + 1],
                                  k=k, H=H, W=W, mxu_dtype=mxu_dtype)

        o_ref[0] = h.astype(o_ref.dtype)
    return kernel


def ublock_forward(x_nchw, embedding, params, *, kernel_size=3,
                   mxu_dtype=jnp.bfloat16):
    """UBlock.forward.  x: (B, Cin, H, W) f32, embedding: (B, emb_dim) f32."""
    B, Cin, H, W = x_nchw.shape
    assert W % 8 == 0, "W must be a multiple of 8 (sublane tile) for in-kernel reshapes"
    emb_dim = embedding.shape[1]
    k = kernel_size
    depth = len(params["convs"])
    Cout = params["convs"][-1][0].shape[-1]

    # Tiny embedding projection (ReLU -> Linear) in plain JAX per perf review:
    # a dedicated Pallas launch for a (B, emb_dim) matmul is pure overhead.
    e = jnp.maximum(embedding.astype(jnp.float32), 0.0) @ params["emb_w"] \
        + params["emb_b"]                                    # (B, Cin)
    e3 = e.reshape(B, 1, Cin)

    # Layout glue only (no compute): channels-last for the kernel.
    x_nhwc = jnp.transpose(x_nchw, (0, 2, 3, 1)).astype(jnp.float32)

    conv_args, conv_specs = [], []
    for (w, b) in params["convs"]:
        kk, cin_i, cout_i = k * k, w.shape[2], w.shape[3]
        conv_args.append(w.reshape(kk, cin_i, cout_i).astype(mxu_dtype))
        conv_specs.append(pl.BlockSpec((kk, cin_i, cout_i), lambda b_: (0, 0, 0)))
        conv_args.append(b.reshape(1, cout_i).astype(jnp.float32))
        conv_specs.append(pl.BlockSpec((1, cout_i), lambda b_: (0, 0)))

    kernel = _make_ublock_kernel(k=k, depth=depth, H=H, W=W, mxu_dtype=mxu_dtype)

    out_nhwc = pl.pallas_call(
        kernel,
        out_shape=jax.ShapeDtypeStruct((B, H, W, Cout), jnp.float32),
        grid=(B,),
        in_specs=[
            pl.BlockSpec((1, 1, Cin), lambda b_: (b_, 0, 0)),        # e
            pl.BlockSpec((1, H, W, Cin), lambda b_: (b_, 0, 0, 0)),  # x
        ] + conv_specs,
        out_specs=pl.BlockSpec((1, H, W, Cout), lambda b_: (b_, 0, 0, 0)),
        compiler_params=pltpu.CompilerParams(
            dimension_semantics=("parallel",)),                      # 2x on v7x
    )(e3, x_nhwc, *conv_args)

    return jnp.transpose(out_nhwc, (0, 3, 1, 2))                     # back to NCHW


# ---------------------------------------------------------------------------
# Pure-JAX (XLA) reference of UBlock.forward, for validation
# ---------------------------------------------------------------------------

def ublock_reference(x_nchw, embedding, params, *, kernel_size=3):
    k = kernel_size
    p = (k - 1) // 2
    e = jnp.maximum(embedding.astype(jnp.float32), 0.0) @ params["emb_w"] \
        + params["emb_b"]
    h = jnp.transpose(x_nchw, (0, 2, 3, 1)).astype(jnp.float32) + e[:, None, None, :]
    for (w, b) in params["convs"]:
        hp = jnp.pad(h, ((0, 0), (p, p), (p, p), (0, 0)), mode="wrap") if p > 0 else h
        h = lax.conv_general_dilated(
            hp, w, window_strides=(1, 1), padding="VALID",
            dimension_numbers=("NHWC", "HWIO", "NHWC"),
            precision=lax.Precision.HIGHEST)
        h = jnp.maximum(h + b, 0.0)
    return jnp.transpose(h, (0, 3, 1, 2))


# ---------------------------------------------------------------------------
# Deterministic parameter initialization (matches the nn.Module shapes)
# ---------------------------------------------------------------------------

def init_ublock_params(key, infeatures, outfeatures, *, depth=2, kernel_size=3,
                       emb_dim=32):
    keys = iter(jax.random.split(key, 2 + 2 * depth))
    emb_w = jax.random.normal(next(keys), (emb_dim, infeatures), jnp.float32) \
        / jnp.sqrt(float(emb_dim))
    emb_b = 0.01 * jax.random.normal(next(keys), (infeatures,), jnp.float32)
    convs = []
    cin = infeatures
    for _ in range(depth):
        w = jax.random.normal(
            next(keys), (kernel_size, kernel_size, cin, outfeatures), jnp.float32
        ) / jnp.sqrt(float(kernel_size * kernel_size * cin))
        b = 0.01 * jax.random.normal(next(keys), (outfeatures,), jnp.float32)
        convs.append((w, b))
        cin = outfeatures
    return {"emb_w": emb_w, "emb_b": emb_b, "convs": convs}


# ---------------------------------------------------------------------------
# Main
# ---------------------------------------------------------------------------

if __name__ == "__main__":
    key = jax.random.PRNGKey(0)
    k_x, k_e, k_p = jax.random.split(key, 3)

    # Small config consistent with UBlock(infeatures=8, outfeatures=16, emb_dim=32)
    B, Cin, Cout, H, W, emb_dim = 2, 8, 16, 16, 16, 32
    kernel_size = 3

    x = jax.random.normal(k_x, (B, Cin, H, W), jnp.float32)          # NCHW like PyTorch
    embedding = jax.random.normal(k_e, (B, emb_dim), jnp.float32)
    params = init_ublock_params(k_p, Cin, Cout, depth=2,
                                kernel_size=kernel_size, emb_dim=emb_dim)

    fwd = jax.jit(functools.partial(ublock_forward, params=params,
                                    kernel_size=kernel_size))
    out = fwd(x, embedding)
    jax.block_until_ready(out)

    assert out.shape == (B, Cout, H, W), out.shape
    assert out.dtype == jnp.float32
    assert bool(jnp.all(jnp.isfinite(out)))

    # Correctness vs pure-JAX f32 reference (tolerance covers bf16 MXU operands).
    ref = ublock_reference(x, embedding, params, kernel_size=kernel_size)
    scale = float(jnp.max(jnp.abs(ref)))
    max_err = float(jnp.max(jnp.abs(out - ref)))
    assert max_err <= 0.05 * scale + 0.05, f"max abs error {max_err} (scale {scale})"

    print("KERNEL_OK")
</pallas_src>

<mosaic_0001>
module attributes {stable_mosaic.version = 11 : i64} {
  func.func @kernel(%arg0: i32, %arg1: memref<1x1x8xf32, #tpu.memory_space<vmem>>, %arg2: memref<1x16x16x8xf32, #tpu.memory_space<vmem>>, %arg3: memref<9x8x16xbf16, #tpu.memory_space<vmem>>, %arg4: memref<1x16xf32, #tpu.memory_space<vmem>>, %arg5: memref<9x16x16xbf16, #tpu.memory_space<vmem>>, %arg6: memref<1x16xf32, #tpu.memory_space<vmem>>, %arg7: memref<1x16x16x16xf32, #tpu.memory_space<vmem>>) attributes {dimension_semantics = [#tpu.dimension_semantics<parallel>], iteration_bounds = array<i64: 2>, scalar_prefetch = 0 : i64, scratch_operands = 0 : i64, tpu.core_type = #tpu.core_type<tc>, window_params = [{transform_indices = @transform_0, window_bounds = array<i64: 1, 1, 8>}, {transform_indices = @transform_1, window_bounds = array<i64: 1, 16, 16, 8>}, {pipeline_mode = #tpu.pipeline_mode<synchronous>, transform_indices = @transform_2, window_bounds = array<i64: 9, 8, 16>}, {pipeline_mode = #tpu.pipeline_mode<synchronous>, transform_indices = @transform_3, window_bounds = array<i64: 1, 16>}, {pipeline_mode = #tpu.pipeline_mode<synchronous>, transform_indices = @transform_4, window_bounds = array<i64: 9, 16, 16>}, {pipeline_mode = #tpu.pipeline_mode<synchronous>, transform_indices = @transform_5, window_bounds = array<i64: 1, 16>}, {transform_indices = @transform_6, window_bounds = array<i64: 1, 16, 16, 16>}]} {
    %c0 = arith.constant 0 : index
    %c0_0 = arith.constant 0 : index
    %c0_1 = arith.constant 0 : index
    %c0_2 = arith.constant 0 : index
    %0 = vector.load %arg2[%c0, %c0_0, %c0_1, %c0_2] : memref<1x16x16x8xf32, #tpu.memory_space<vmem>>, vector<1x16x16x8xf32>
    %1 = vector.shape_cast %0 : vector<1x16x16x8xf32> to vector<16x16x8xf32>
    %c0_3 = arith.constant 0 : index
    %c0_4 = arith.constant 0 : index
    %c0_5 = arith.constant 0 : index
    %2 = vector.load %arg1[%c0_3, %c0_4, %c0_5] : memref<1x1x8xf32, #tpu.memory_space<vmem>>, vector<1x1x8xf32>
    %3 = vector.shape_cast %2 : vector<1x1x8xf32> to vector<1x8xf32>
    %4 = vector.shape_cast %3 : vector<1x8xf32> to vector<1x1x8xf32>
    %5 = vector.broadcast %4 : vector<1x1x8xf32> to vector<16x16x8xf32>
    %6 = arith.addf %1, %5 : vector<16x16x8xf32>
    %7 = vector.extract_strided_slice %6 {offsets = [15, 0, 0], sizes = [1, 16, 8], strides = [1, 1, 1]} : vector<16x16x8xf32> to vector<1x16x8xf32>
    %8 = vector.extract_strided_slice %6 {offsets = [0, 0, 0], sizes = [1, 16, 8], strides = [1, 1, 1]} : vector<16x16x8xf32> to vector<1x16x8xf32>
    %9 = tpu.concatenate %7, %6, %8 in 0 : vector<1x16x8xf32>, vector<16x16x8xf32>, vector<1x16x8xf32> -> vector<18x16x8xf32>
    %cst = arith.constant 0.000000e+00 : f32
    %10 = vector.broadcast %cst : f32 to vector<256x16xf32>
    %11 = vector.extract_strided_slice %9 {offsets = [0, 15, 0], sizes = [18, 1, 8], strides = [1, 1, 1]} : vector<18x16x8xf32> to vector<18x1x8xf32>
    %12 = vector.extract_strided_slice %9 {offsets = [0, 0, 0], sizes = [18, 15, 8], strides = [1, 1, 1]} : vector<18x16x8xf32> to vector<18x15x8xf32>
    %13 = tpu.concatenate %11, %12 in 1 : vector<18x1x8xf32>, vector<18x15x8xf32> -> vector<18x16x8xf32>
    %14 = vector.extract_strided_slice %13 {offsets = [0, 0, 0], sizes = [16, 16, 8], strides = [1, 1, 1]} : vector<18x16x8xf32> to vector<16x16x8xf32>
    %15 = vector.shape_cast %14 : vector<16x16x8xf32> to vector<256x8xf32>
    %16 = arith.truncf %15 : vector<256x8xf32> to vector<256x8xbf16>
    %c0_6 = arith.constant 0 : index
    %c0_7 = arith.constant 0 : index
    %c0_8 = arith.constant 0 : index
    %17 = vector.load %arg3[%c0_6, %c0_7, %c0_8] : memref<9x8x16xbf16, #tpu.memory_space<vmem>>, vector<1x8x16xbf16>
    %18 = vector.shape_cast %17 : vector<1x8x16xbf16> to vector<8x16xbf16>
    %cst_9 = arith.constant dense<0.000000e+00> : vector<256x16xf32>
    %19 = tpu.matmul %16, %18, %cst_9 {dimension_numbers = #tpu.dot_dimension_numbers<[1], [0], [0], [1], [0, 0, 1, 1], [], []>} : vector<256x8xbf16>, vector<8x16xbf16>, vector<256x16xf32> -> vector<256x16xf32>
    %20 = arith.addf %10, %19 : vector<256x16xf32>
    %21 = vector.extract_strided_slice %13 {offsets = [1, 0, 0], sizes = [16, 16, 8], strides = [1, 1, 1]} : vector<18x16x8xf32> to vector<16x16x8xf32>
    %22 = vector.shape_cast %21 : vector<16x16x8xf32> to vector<256x8xf32>
    %23 = arith.truncf %22 : vector<256x8xf32> to vector<256x8xbf16>
    %c3 = arith.constant 3 : index
    %c0_10 = arith.constant 0 : index
    %c0_11 = arith.constant 0 : index
    %24 = vector.load %arg3[%c3, %c0_10, %c0_11] : memref<9x8x16xbf16, #tpu.memory_space<vmem>>, vector<1x8x16xbf16>
    %25 = vector.shape_cast %24 : vector<1x8x16xbf16> to vector<8x16xbf16>
    %cst_12 = arith.constant dense<0.000000e+00> : vector<256x16xf32>
    %26 = tpu.matmul %23, %25, %cst_12 {dimension_numbers = #tpu.dot_dimension_numbers<[1], [0], [0], [1], [0, 0, 1, 1], [], []>} : vector<256x8xbf16>, vector<8x16xbf16>, vector<256x16xf32> -> vector<256x16xf32>
    %27 = arith.addf %20, %26 : vector<256x16xf32>
    %28 = vector.extract_strided_slice %13 {offsets = [2, 0, 0], sizes = [16, 16, 8], strides = [1, 1, 1]} : vector<18x16x8xf32> to vector<16x16x8xf32>
    %29 = vector.shape_cast %28 : vector<16x16x8xf32> to vector<256x8xf32>
    %30 = arith.truncf %29 : vector<256x8xf32> to vector<256x8xbf16>
    %c6 = arith.constant 6 : index
    %c0_13 = arith.constant 0 : index
    %c0_14 = arith.constant 0 : index
    %31 = vector.load %arg3[%c6, %c0_13, %c0_14] : memref<9x8x16xbf16, #tpu.memory_space<vmem>>, vector<1x8x16xbf16>
    %32 = vector.shape_cast %31 : vector<1x8x16xbf16> to vector<8x16xbf16>
    %cst_15 = arith.constant dense<0.000000e+00> : vector<256x16xf32>
    %33 = tpu.matmul %30, %32, %cst_15 {dimension_numbers = #tpu.dot_dimension_numbers<[1], [0], [0], [1], [0, 0, 1, 1], [], []>} : vector<256x8xbf16>, vector<8x16xbf16>, vector<256x16xf32> -> vector<256x16xf32>
    %34 = arith.addf %27, %33 : vector<256x16xf32>
    %35 = vector.extract_strided_slice %9 {offsets = [0, 0, 0], sizes = [16, 16, 8], strides = [1, 1, 1]} : vector<18x16x8xf32> to vector<16x16x8xf32>
    %36 = vector.shape_cast %35 : vector<16x16x8xf32> to vector<256x8xf32>
    %37 = arith.truncf %36 : vector<256x8xf32> to vector<256x8xbf16>
    %c1 = arith.constant 1 : index
    %c0_16 = arith.constant 0 : index
    %c0_17 = arith.constant 0 : index
    %38 = vector.load %arg3[%c1, %c0_16, %c0_17] : memref<9x8x16xbf16, #tpu.memory_space<vmem>>, vector<1x8x16xbf16>
    %39 = vector.shape_cast %38 : vector<1x8x16xbf16> to vector<8x16xbf16>
    %cst_18 = arith.constant dense<0.000000e+00> : vector<256x16xf32>
    %40 = tpu.matmul %37, %39, %cst_18 {dimension_numbers = #tpu.dot_dimension_numbers<[1], [0], [0], [1], [0, 0, 1, 1], [], []>} : vector<256x8xbf16>, vector<8x16xbf16>, vector<256x16xf32> -> vector<256x16xf32>
    %41 = arith.addf %34, %40 : vector<256x16xf32>
    %42 = vector.extract_strided_slice %9 {offsets = [1, 0, 0], sizes = [16, 16, 8], strides = [1, 1, 1]} : vector<18x16x8xf32> to vector<16x16x8xf32>
    %43 = vector.shape_cast %42 : vector<16x16x8xf32> to vector<256x8xf32>
    %44 = arith.truncf %43 : vector<256x8xf32> to vector<256x8xbf16>
    %c4 = arith.constant 4 : index
    %c0_19 = arith.constant 0 : index
    %c0_20 = arith.constant 0 : index
    %45 = vector.load %arg3[%c4, %c0_19, %c0_20] : memref<9x8x16xbf16, #tpu.memory_space<vmem>>, vector<1x8x16xbf16>
    %46 = vector.shape_cast %45 : vector<1x8x16xbf16> to vector<8x16xbf16>
    %cst_21 = arith.constant dense<0.000000e+00> : vector<256x16xf32>
    %47 = tpu.matmul %44, %46, %cst_21 {dimension_numbers = #tpu.dot_dimension_numbers<[1], [0], [0], [1], [0, 0, 1, 1], [], []>} : vector<256x8xbf16>, vector<8x16xbf16>, vector<256x16xf32> -> vector<256x16xf32>
    %48 = arith.addf %41, %47 : vector<256x16xf32>
    %49 = vector.extract_strided_slice %9 {offsets = [2, 0, 0], sizes = [16, 16, 8], strides = [1, 1, 1]} : vector<18x16x8xf32> to vector<16x16x8xf32>
    %50 = vector.shape_cast %49 : vector<16x16x8xf32> to vector<256x8xf32>
    %51 = arith.truncf %50 : vector<256x8xf32> to vector<256x8xbf16>
    %c7 = arith.constant 7 : index
    %c0_22 = arith.constant 0 : index
    %c0_23 = arith.constant 0 : index
    %52 = vector.load %arg3[%c7, %c0_22, %c0_23] : memref<9x8x16xbf16, #tpu.memory_space<vmem>>, vector<1x8x16xbf16>
    %53 = vector.shape_cast %52 : vector<1x8x16xbf16> to vector<8x16xbf16>
    %cst_24 = arith.constant dense<0.000000e+00> : vector<256x16xf32>
    %54 = tpu.matmul %51, %53, %cst_24 {dimension_numbers = #tpu.dot_dimension_numbers<[1], [0], [0], [1], [0, 0, 1, 1], [], []>} : vector<256x8xbf16>, vector<8x16xbf16>, vector<256x16xf32> -> vector<256x16xf32>
    %55 = arith.addf %48, %54 : vector<256x16xf32>
    %56 = vector.extract_strided_slice %9 {offsets = [0, 1, 0], sizes = [18, 15, 8], strides = [1, 1, 1]} : vector<18x16x8xf32> to vector<18x15x8xf32>
    %57 = vector.extract_strided_slice %9 {offsets = [0, 0, 0], sizes = [18, 1, 8], strides = [1, 1, 1]} : vector<18x16x8xf32> to vector<18x1x8xf32>
    %58 = tpu.concatenate %56, %57 in 1 : vector<18x15x8xf32>, vector<18x1x8xf32> -> vector<18x16x8xf32>
    %59 = vector.extract_strided_slice %58 {offsets = [0, 0, 0], sizes = [16, 16, 8], strides = [1, 1, 1]} : vector<18x16x8xf32> to vector<16x16x8xf32>
    %60 = vector.shape_cast %59 : vector<16x16x8xf32> to vector<256x8xf32>
    %61 = arith.truncf %60 : vector<256x8xf32> to vector<256x8xbf16>
    %c2 = arith.constant 2 : index
    %c0_25 = arith.constant 0 : index
    %c0_26 = arith.constant 0 : index
    %62 = vector.load %arg3[%c2, %c0_25, %c0_26] : memref<9x8x16xbf16, #tpu.memory_space<vmem>>, vector<1x8x16xbf16>
    %63 = vector.shape_cast %62 : vector<1x8x16xbf16> to vector<8x16xbf16>
    %cst_27 = arith.constant dense<0.000000e+00> : vector<256x16xf32>
    %64 = tpu.matmul %61, %63, %cst_27 {dimension_numbers = #tpu.dot_dimension_numbers<[1], [0], [0], [1], [0, 0, 1, 1], [], []>} : vector<256x8xbf16>, vector<8x16xbf16>, vector<256x16xf32> -> vector<256x16xf32>
    %65 = arith.addf %55, %64 : vector<256x16xf32>
    %66 = vector.extract_strided_slice %58 {offsets = [1, 0, 0], sizes = [16, 16, 8], strides = [1, 1, 1]} : vector<18x16x8xf32> to vector<16x16x8xf32>
    %67 = vector.shape_cast %66 : vector<16x16x8xf32> to vector<256x8xf32>
    %68 = arith.truncf %67 : vector<256x8xf32> to vector<256x8xbf16>
    %c5 = arith.constant 5 : index
    %c0_28 = arith.constant 0 : index
    %c0_29 = arith.constant 0 : index
    %69 = vector.load %arg3[%c5, %c0_28, %c0_29] : memref<9x8x16xbf16, #tpu.memory_space<vmem>>, vector<1x8x16xbf16>
    %70 = vector.shape_cast %69 : vector<1x8x16xbf16> to vector<8x16xbf16>
    %cst_30 = arith.constant dense<0.000000e+00> : vector<256x16xf32>
    %71 = tpu.matmul %68, %70, %cst_30 {dimension_numbers = #tpu.dot_dimension_numbers<[1], [0], [0], [1], [0, 0, 1, 1], [], []>} : vector<256x8xbf16>, vector<8x16xbf16>, vector<256x16xf32> -> vector<256x16xf32>
    %72 = arith.addf %65, %71 : vector<256x16xf32>
    %73 = vector.extract_strided_slice %58 {offsets = [2, 0, 0], sizes = [16, 16, 8], strides = [1, 1, 1]} : vector<18x16x8xf32> to vector<16x16x8xf32>
    %74 = vector.shape_cast %73 : vector<16x16x8xf32> to vector<256x8xf32>
    %75 = arith.truncf %74 : vector<256x8xf32> to vector<256x8xbf16>
    %c8 = arith.constant 8 : index
    %c0_31 = arith.constant 0 : index
    %c0_32 = arith.constant 0 : index
    %76 = vector.load %arg3[%c8, %c0_31, %c0_32] : memref<9x8x16xbf16, #tpu.memory_space<vmem>>, vector<1x8x16xbf16>
    %77 = vector.shape_cast %76 : vector<1x8x16xbf16> to vector<8x16xbf16>
    %cst_33 = arith.constant dense<0.000000e+00> : vector<256x16xf32>
    %78 = tpu.matmul %75, %77, %cst_33 {dimension_numbers = #tpu.dot_dimension_numbers<[1], [0], [0], [1], [0, 0, 1, 1], [], []>} : vector<256x8xbf16>, vector<8x16xbf16>, vector<256x16xf32> -> vector<256x16xf32>
    %79 = arith.addf %72, %78 : vector<256x16xf32>
    %c0_34 = arith.constant 0 : index
    %c0_35 = arith.constant 0 : index
    %80 = vector.load %arg4[%c0_34, %c0_35] : memref<1x16xf32, #tpu.memory_space<vmem>>, vector<1x16xf32>
    %81 = vector.broadcast %80 : vector<1x16xf32> to vector<256x16xf32>
    %82 = arith.addf %79, %81 : vector<256x16xf32>
    %cst_36 = arith.constant 0.000000e+00 : f32
    %83 = vector.broadcast %cst_36 : f32 to vector<256x16xf32>
    %84 = arith.maximumf %82, %83 : vector<256x16xf32>
    %85 = vector.shape_cast %84 : vector<256x16xf32> to vector<16x16x16xf32>
    %86 = vector.extract_strided_slice %85 {offsets = [15, 0, 0], sizes = [1, 16, 16], strides = [1, 1, 1]} : vector<16x16x16xf32> to vector<1x16x16xf32>
    %87 = vector.extract_strided_slice %85 {offsets = [0, 0, 0], sizes = [1, 16, 16], strides = [1, 1, 1]} : vector<16x16x16xf32> to vector<1x16x16xf32>
    %88 = tpu.concatenate %86, %85, %87 in 0 : vector<1x16x16xf32>, vector<16x16x16xf32>, vector<1x16x16xf32> -> vector<18x16x16xf32>
    %cst_37 = arith.constant 0.000000e+00 : f32
    %89 = vector.broadcast %cst_37 : f32 to vector<256x16xf32>
    %90 = vector.extract_strided_slice %88 {offsets = [0, 15, 0], sizes = [18, 1, 16], strides = [1, 1, 1]} : vector<18x16x16xf32> to vector<18x1x16xf32>
    %91 = vector.extract_strided_slice %88 {offsets = [0, 0, 0], sizes = [18, 15, 16], strides = [1, 1, 1]} : vector<18x16x16xf32> to vector<18x15x16xf32>
    %92 = tpu.concatenate %90, %91 in 1 : vector<18x1x16xf32>, vector<18x15x16xf32> -> vector<18x16x16xf32>
    %93 = vector.extract_strided_slice %92 {offsets = [0, 0, 0], sizes = [16, 16, 16], strides = [1, 1, 1]} : vector<18x16x16xf32> to vector<16x16x16xf32>
    %94 = vector.shape_cast %93 : vector<16x16x16xf32> to vector<256x16xf32>
    %95 = arith.truncf %94 : vector<256x16xf32> to vector<256x16xbf16>
    %c0_38 = arith.constant 0 : index
    %c0_39 = arith.constant 0 : index
    %c0_40 = arith.constant 0 : index
    %96 = vector.load %arg5[%c0_38, %c0_39, %c0_40] : memref<9x16x16xbf16, #tpu.memory_space<vmem>>, vector<1x16x16xbf16>
    %97 = vector.shape_cast %96 : vector<1x16x16xbf16> to vector<16x16xbf16>
    %cst_41 = arith.constant dense<0.000000e+00> : vector<256x16xf32>
    %98 = tpu.matmul %95, %97, %cst_41 {dimension_numbers = #tpu.dot_dimension_numbers<[1], [0], [0], [1], [0, 0, 1, 1], [], []>} : vector<256x16xbf16>, vector<16x16xbf16>, vector<256x16xf32> -> vector<256x16xf32>
    %99 = arith.addf %89, %98 : vector<256x16xf32>
    %100 = vector.extract_strided_slice %92 {offsets = [1, 0, 0], sizes = [16, 16, 16], strides = [1, 1, 1]} : vector<18x16x16xf32> to vector<16x16x16xf32>
    %101 = vector.shape_cast %100 : vector<16x16x16xf32> to vector<256x16xf32>
    %102 = arith.truncf %101 : vector<256x16xf32> to vector<256x16xbf16>
    %c3_42 = arith.constant 3 : index
    %c0_43 = arith.constant 0 : index
    %c0_44 = arith.constant 0 : index
    %103 = vector.load %arg5[%c3_42, %c0_43, %c0_44] : memref<9x16x16xbf16, #tpu.memory_space<vmem>>, vector<1x16x16xbf16>
    %104 = vector.shape_cast %103 : vector<1x16x16xbf16> to vector<16x16xbf16>
    %cst_45 = arith.constant dense<0.000000e+00> : vector<256x16xf32>
    %105 = tpu.matmul %102, %104, %cst_45 {dimension_numbers = #tpu.dot_dimension_numbers<[1], [0], [0], [1], [0, 0, 1, 1], [], []>} : vector<256x16xbf16>, vector<16x16xbf16>, vector<256x16xf32> -> vector<256x16xf32>
    %106 = arith.addf %99, %105 : vector<256x16xf32>
    %107 = vector.extract_strided_slice %92 {offsets = [2, 0, 0], sizes = [16, 16, 16], strides = [1, 1, 1]} : vector<18x16x16xf32> to vector<16x16x16xf32>
    %108 = vector.shape_cast %107 : vector<16x16x16xf32> to vector<256x16xf32>
    %109 = arith.truncf %108 : vector<256x16xf32> to vector<256x16xbf16>
    %c6_46 = arith.constant 6 : index
    %c0_47 = arith.constant 0 : index
    %c0_48 = arith.constant 0 : index
    %110 = vector.load %arg5[%c6_46, %c0_47, %c0_48] : memref<9x16x16xbf16, #tpu.memory_space<vmem>>, vector<1x16x16xbf16>
    %111 = vector.shape_cast %110 : vector<1x16x16xbf16> to vector<16x16xbf16>
    %cst_49 = arith.constant dense<0.000000e+00> : vector<256x16xf32>
    %112 = tpu.matmul %109, %111, %cst_49 {dimension_numbers = #tpu.dot_dimension_numbers<[1], [0], [0], [1], [0, 0, 1, 1], [], []>} : vector<256x16xbf16>, vector<16x16xbf16>, vector<256x16xf32> -> vector<256x16xf32>
    %113 = arith.addf %106, %112 : vector<256x16xf32>
    %114 = vector.extract_strided_slice %88 {offsets = [0, 0, 0], sizes = [16, 16, 16], strides = [1, 1, 1]} : vector<18x16x16xf32> to vector<16x16x16xf32>
    %115 = vector.shape_cast %114 : vector<16x16x16xf32> to vector<256x16xf32>
    %116 = arith.truncf %115 : vector<256x16xf32> to vector<256x16xbf16>
    %c1_50 = arith.constant 1 : index
    %c0_51 = arith.constant 0 : index
    %c0_52 = arith.constant 0 : index
    %117 = vector.load %arg5[%c1_50, %c0_51, %c0_52] : memref<9x16x16xbf16, #tpu.memory_space<vmem>>, vector<1x16x16xbf16>
    %118 = vector.shape_cast %117 : vector<1x16x16xbf16> to vector<16x16xbf16>
    %cst_53 = arith.constant dense<0.000000e+00> : vector<256x16xf32>
    %119 = tpu.matmul %116, %118, %cst_53 {dimension_numbers = #tpu.dot_dimension_numbers<[1], [0], [0], [1], [0, 0, 1, 1], [], []>} : vector<256x16xbf16>, vector<16x16xbf16>, vector<256x16xf32> -> vector<256x16xf32>
    %120 = arith.addf %113, %119 : vector<256x16xf32>
    %121 = vector.extract_strided_slice %88 {offsets = [1, 0, 0], sizes = [16, 16, 16], strides = [1, 1, 1]} : vector<18x16x16xf32> to vector<16x16x16xf32>
    %122 = vector.shape_cast %121 : vector<16x16x16xf32> to vector<256x16xf32>
    %123 = arith.truncf %122 : vector<256x16xf32> to vector<256x16xbf16>
    %c4_54 = arith.constant 4 : index
    %c0_55 = arith.constant 0 : index
    %c0_56 = arith.constant 0 : index
    %124 = vector.load %arg5[%c4_54, %c0_55, %c0_56] : memref<9x16x16xbf16, #tpu.memory_space<vmem>>, vector<1x16x16xbf16>
    %125 = vector.shape_cast %124 : vector<1x16x16xbf16> to vector<16x16xbf16>
    %cst_57 = arith.constant dense<0.000000e+00> : vector<256x16xf32>
    %126 = tpu.matmul %123, %125, %cst_57 {dimension_numbers = #tpu.dot_dimension_numbers<[1], [0], [0], [1], [0, 0, 1, 1], [], []>} : vector<256x16xbf16>, vector<16x16xbf16>, vector<256x16xf32> -> vector<256x16xf32>
    %127 = arith.addf %120, %126 : vector<256x16xf32>
    %128 = vector.extract_strided_slice %88 {offsets = [2, 0, 0], sizes = [16, 16, 16], strides = [1, 1, 1]} : vector<18x16x16xf32> to vector<16x16x16xf32>
    %129 = vector.shape_cast %128 : vector<16x16x16xf32> to vector<256x16xf32>
    %130 = arith.truncf %129 : vector<256x16xf32> to vector<256x16xbf16>
    %c7_58 = arith.constant 7 : index
    %c0_59 = arith.constant 0 : index
    %c0_60 = arith.constant 0 : index
    %131 = vector.load %arg5[%c7_58, %c0_59, %c0_60] : memref<9x16x16xbf16, #tpu.memory_space<vmem>>, vector<1x16x16xbf16>
    %132 = vector.shape_cast %131 : vector<1x16x16xbf16> to vector<16x16xbf16>
    %cst_61 = arith.constant dense<0.000000e+00> : vector<256x16xf32>
    %133 = tpu.matmul %130, %132, %cst_61 {dimension_numbers = #tpu.dot_dimension_numbers<[1], [0], [0], [1], [0, 0, 1, 1], [], []>} : vector<256x16xbf16>, vector<16x16xbf16>, vector<256x16xf32> -> vector<256x16xf32>
    %134 = arith.addf %127, %133 : vector<256x16xf32>
    %135 = vector.extract_strided_slice %88 {offsets = [0, 1, 0], sizes = [18, 15, 16], strides = [1, 1, 1]} : vector<18x16x16xf32> to vector<18x15x16xf32>
    %136 = vector.extract_strided_slice %88 {offsets = [0, 0, 0], sizes = [18, 1, 16], strides = [1, 1, 1]} : vector<18x16x16xf32> to vector<18x1x16xf32>
    %137 = tpu.concatenate %135, %136 in 1 : vector<18x15x16xf32>, vector<18x1x16xf32> -> vector<18x16x16xf32>
    %138 = vector.extract_strided_slice %137 {offsets = [0, 0, 0], sizes = [16, 16, 16], strides = [1, 1, 1]} : vector<18x16x16xf32> to vector<16x16x16xf32>
    %139 = vector.shape_cast %138 : vector<16x16x16xf32> to vector<256x16xf32>
    %140 = arith.truncf %139 : vector<256x16xf32> to vector<256x16xbf16>
    %c2_62 = arith.constant 2 : index
    %c0_63 = arith.constant 0 : index
    %c0_64 = arith.constant 0 : index
    %141 = vector.load %arg5[%c2_62, %c0_63, %c0_64] : memref<9x16x16xbf16, #tpu.memory_space<vmem>>, vector<1x16x16xbf16>
    %142 = vector.shape_cast %141 : vector<1x16x16xbf16> to vector<16x16xbf16>
    %cst_65 = arith.constant dense<0.000000e+00> : vector<256x16xf32>
    %143 = tpu.matmul %140, %142, %cst_65 {dimension_numbers = #tpu.dot_dimension_numbers<[1], [0], [0], [1], [0, 0, 1, 1], [], []>} : vector<256x16xbf16>, vector<16x16xbf16>, vector<256x16xf32> -> vector<256x16xf32>
    %144 = arith.addf %134, %143 : vector<256x16xf32>
    %145 = vector.extract_strided_slice %137 {offsets = [1, 0, 0], sizes = [16, 16, 16], strides = [1, 1, 1]} : vector<18x16x16xf32> to vector<16x16x16xf32>
    %146 = vector.shape_cast %145 : vector<16x16x16xf32> to vector<256x16xf32>
    %147 = arith.truncf %146 : vector<256x16xf32> to vector<256x16xbf16>
    %c5_66 = arith.constant 5 : index
    %c0_67 = arith.constant 0 : index
    %c0_68 = arith.constant 0 : index
    %148 = vector.load %arg5[%c5_66, %c0_67, %c0_68] : memref<9x16x16xbf16, #tpu.memory_space<vmem>>, vector<1x16x16xbf16>
    %149 = vector.shape_cast %148 : vector<1x16x16xbf16> to vector<16x16xbf16>
    %cst_69 = arith.constant dense<0.000000e+00> : vector<256x16xf32>
    %150 = tpu.matmul %147, %149, %cst_69 {dimension_numbers = #tpu.dot_dimension_numbers<[1], [0], [0], [1], [0, 0, 1, 1], [], []>} : vector<256x16xbf16>, vector<16x16xbf16>, vector<256x16xf32> -> vector<256x16xf32>
    %151 = arith.addf %144, %150 : vector<256x16xf32>
    %152 = vector.extract_strided_slice %137 {offsets = [2, 0, 0], sizes = [16, 16, 16], strides = [1, 1, 1]} : vector<18x16x16xf32> to vector<16x16x16xf32>
    %153 = vector.shape_cast %152 : vector<16x16x16xf32> to vector<256x16xf32>
    %154 = arith.truncf %153 : vector<256x16xf32> to vector<256x16xbf16>
    %c8_70 = arith.constant 8 : index
    %c0_71 = arith.constant 0 : index
    %c0_72 = arith.constant 0 : index
    %155 = vector.load %arg5[%c8_70, %c0_71, %c0_72] : memref<9x16x16xbf16, #tpu.memory_space<vmem>>, vector<1x16x16xbf16>
    %156 = vector.shape_cast %155 : vector<1x16x16xbf16> to vector<16x16xbf16>
    %cst_73 = arith.constant dense<0.000000e+00> : vector<256x16xf32>
    %157 = tpu.matmul %154, %156, %cst_73 {dimension_numbers = #tpu.dot_dimension_numbers<[1], [0], [0], [1], [0, 0, 1, 1], [], []>} : vector<256x16xbf16>, vector<16x16xbf16>, vector<256x16xf32> -> vector<256x16xf32>
    %158 = arith.addf %151, %157 : vector<256x16xf32>
    %c0_74 = arith.constant 0 : index
    %c0_75 = arith.constant 0 : index
    %159 = vector.load %arg6[%c0_74, %c0_75] : memref<1x16xf32, #tpu.memory_space<vmem>>, vector<1x16xf32>
    %160 = vector.broadcast %159 : vector<1x16xf32> to vector<256x16xf32>
    %161 = arith.addf %158, %160 : vector<256x16xf32>
    %cst_76 = arith.constant 0.000000e+00 : f32
    %162 = vector.broadcast %cst_76 : f32 to vector<256x16xf32>
    %163 = arith.maximumf %161, %162 : vector<256x16xf32>
    %164 = vector.shape_cast %163 : vector<256x16xf32> to vector<16x16x16xf32>
    %c0_77 = arith.constant 0 : index
    %c0_78 = arith.constant 0 : index
    %c0_79 = arith.constant 0 : index
    %c0_80 = arith.constant 0 : index
    %165 = vector.load %arg7[%c0_77, %c0_78, %c0_79, %c0_80] : memref<1x16x16x16xf32, #tpu.memory_space<vmem>>, vector<1x16x16x16xf32>
    %166 = vector.shape_cast %165 : vector<1x16x16x16xf32> to vector<16x16x16xf32>
    %167 = vector.shape_cast %164 : vector<16x16x16xf32> to vector<1x16x16x16xf32>
    tpu.vector_store %arg7[%c0_77, %c0_78, %c0_79, %c0_80], %167 {strides = array<i32>} : memref<1x16x16x16xf32, #tpu.memory_space<vmem>>, vector<1x16x16x16xf32>,
    return
  }
  func.func @transform_0(%arg0: i32) -> (i32, i32, i32) {
    %c0_i32 = arith.constant 0 : i32
    %c0_i32_0 = arith.constant 0 : i32
    %c0_i32_1 = arith.constant 0 : i32
    return %arg0, %c0_i32, %c0_i32_0 : i32, i32, i32
  }
  func.func @transform_1(%arg0: i32) -> (i32, i32, i32, i32) {
    %c0_i32 = arith.constant 0 : i32
    %c0_i32_0 = arith.constant 0 : i32
    %c0_i32_1 = arith.constant 0 : i32
    %c0_i32_2 = arith.constant 0 : i32
    return %arg0, %c0_i32, %c0_i32_0, %c0_i32_1 : i32, i32, i32, i32
  }
  func.func @transform_2(%arg0: i32) -> (i32, i32, i32) {
    %c0_i32 = arith.constant 0 : i32
    %c0_i32_0 = arith.constant 0 : i32
    %c0_i32_1 = arith.constant 0 : i32
    %c0_i32_2 = arith.constant 0 : i32
    return %c0_i32, %c0_i32_0, %c0_i32_1 : i32, i32, i32
  }
  func.func @transform_3(%arg0: i32) -> (i32, i32) {
    %c0_i32 = arith.constant 0 : i32
    %c0_i32_0 = arith.constant 0 : i32
    %c0_i32_1 = arith.constant 0 : i32
    return %c0_i32, %c0_i32_0 : i32, i32
  }
  func.func @transform_4(%arg0: i32) -> (i32, i32, i32) {
    %c0_i32 = arith.constant 0 : i32
    %c0_i32_0 = arith.constant 0 : i32
    %c0_i32_1 = arith.constant 0 : i32
    %c0_i32_2 = arith.constant 0 : i32
    return %c0_i32, %c0_i32_0, %c0_i32_1 : i32, i32, i32
  }
  func.func @transform_5(%arg0: i32) -> (i32, i32) {
    %c0_i32 = arith.constant 0 : i32
    %c0_i32_0 = arith.constant 0 : i32
    %c0_i32_1 = arith.constant 0 : i32
    return %c0_i32, %c0_i32_0 : i32, i32
  }
  func.func @transform_6(%arg0: i32) -> (i32, i32, i32, i32) {
    %c0_i32 = arith.constant 0 : i32
    %c0_i32_0 = arith.constant 0 : i32
    %c0_i32_1 = arith.constant 0 : i32
    %c0_i32_2 = arith.constant 0 : i32
    return %arg0, %c0_i32, %c0_i32_0, %c0_i32_1 : i32, i32, i32, i32
  }
}

</mosaic_0001>

<bundles_post_ra>
// kernel: ublock_forward.1
= control target key start
LH: loop header
LB: loop body
LE: loop exit
PB: predicated region body
PF: predicated region fallthrough
CT: control target
= control target key end

     0   :  { %s6783_s21 = smov 0   ;;  %s8019_s0 = inlined_call_operand.vmem [shape: f32[2,1,8], index: 0, kind: input, shape index: {}]   ;;  %s8020_s1 = inlined_call_operand.vmem [shape: f32[2,16,16,8], index: 1, kind: input, shape index: {}]   ;;  %s8021_s2 = inlined_call_operand.vmem [shape: bf16[9,8,16], index: 2, kind: input, shape index: {}]   ;;  %s8022_s3 = inlined_call_operand.vmem [shape: f32[1,16], index: 3, kind: input, shape index: {}]   ;;  %s8023_s4 = inlined_call_operand.vmem [shape: bf16[9,16,16], index: 4, kind: input, shape index: {}]   ;;  %s8024_s5 = inlined_call_operand.vmem [shape: f32[1,16], index: 5, kind: input, shape index: {}]   ;;  %s8025_s6 = inlined_call_operand.vmem [shape: f32[2,16,16,16], index: 6, kind: output, shape index: {}]  }
   0x1 LB: > { %s4947_s22 = sadd.s32 4294967295, %s6746_s21   ;;  %p4951_p0 = scmp.ge.s32.totalorder %s6746_s21, 1  ;;  %s6746_s21 = sphi %s6783_s21, %s16_s21  }
   0x2   : > { %p220_p1 = scmp.lt.s32.totalorder %s6746_s21, 3 }
   0x4   : > { %p221_p2 = pnand %p4951_p0, %p220_p1 }
   0x6   : > { %224 = sbr.rel (%p221_p2) target bundleno = 1553 (0x611), region = 44 }
   0xd   : > { %v4957_v0 = vld [vmem:[%s8021_s2 + $0xc] sm:$0xf]  ;;  %vm551_vm0 = vcmask 1043456   ;;  %p253_p3 = scmp.lt.s32.totalorder %s4947_s22, 1  ;;  %v499_v2 = vld [vmem:[%s8021_s2] sm:$0xf] }
   0xe   : > { %6714 = vmatprep.subr.msk.bf16.mxu0 %vm551_vm0, %v4957_v0  ;;  %v553_v1 = vsel %vm551_vm0, %v4957_v0, 0  ;;  %vm402_vm1 = vcmask 1040384   ;;  %vm502_vm2 = vcmask 64512   ;;  %v717_v20 = vsel %vm551_vm0, %v499_v2, 0  ;;  %v6886_v46 = vld [vmem:[%s8021_s2 + $0x18] sm:$0xf] }
   0xf   : > { %5591 = vmatpush3.bf16.msra.mxu0 %v553_v1  ;;  %s8030_s22 = smov (!%p253_p3, %s4947_s22), 1  ;;  %vm1736_vm3 = vcmask 1046528   ;;  %vm2749_vm4 = vcmask 130048  }
  0x10   : > { %6715 = vmatprep.subr.msk.bf16.mxu0 %vm551_vm0, %v499_v2  ;;  %s255_s29 = scalar_lea.vmem %s8019_s0, %s8030_s22  ;;  %s5282_s30 = sshll.u32 %s8030_s22, 8 }
  0x11   : > { %s6812_s9 = scalar_lea.vmem %s8020_s1, %s5282_s30  ;;  %v6814_v3 = vld [vmem:[%s255_s29] ss:$0 sm:$0xff]  ;;  %s7919_s29 = scalar_lea.vmem %s8025_s6, %s5282_s30 }
  0x12   : > { %v267_v4 = vld [vmem:[%s6812_s9] sm:$0xff]  ;;  %v268_v5 = vld [vmem:[%s6812_s9 + $0x8] sm:$0xff]  ;;  %v269_v6 = vld [vmem:[%s6812_s9 + $0x10] sm:$0xff] }
  0x13   : > { %v6820_v7 = vadd.f32 %v6814_v3, %v267_v4  ;;  %v6823_v8 = vadd.f32 %v6814_v3, %v268_v5  ;;  %v270_v9 = vld [vmem:[%s6812_s9 + $0x18] sm:$0xff]  ;;  %v6827_v10 = vadd.f32 %v6814_v3, %v269_v6  ;;  %v271_v11 = vld [vmem:[%s6812_s9 + $0x20] sm:$0xff]  ;;  %v272_v12 = vld [vmem:[%s6812_s9 + $0x28] sm:$0xff] }
  0x14   : > { %v6832_v13 = vadd.f32 %v6814_v3, %v270_v9  ;;  %v6835_v14 = vadd.f32 %v6814_v3, %v271_v11  ;;  %v6838_v15 = vadd.f32 %v6814_v3, %v272_v12  ;;  %v273_v16 = vld [vmem:[%s6812_s9 + $0x30] sm:$0xff]  ;;  %v274_v17 = vld [vmem:[%s6812_s9 + $0x38] sm:$0xff]  ;;  %v275_v29 = vld [vmem:[%s6812_s9 + $0x40] sm:$0xff] }
  0x15   : > { %v355_v18 = vrot.slane %v6823_v8, 7  ;;  %v405_v19 = vrot.slane %v6820_v7, 7  ;;  %v407_v22 = vrot.slane %v6827_v10, 7  ;;  %v6852_v27 = vadd.f32 %v6814_v3, %v273_v16  ;;  %v276_v30 = vld [vmem:[%s6812_s9 + $0x48] sm:$0xff]  ;;  %v277_v35 = vld [vmem:[%s6812_s9 + $0x50] sm:$0xff]  ;;  %v278_v40 = vld [vmem:[%s6812_s9 + $0x58] sm:$0xff] }
  0x16   : > { %v356_v21 = vrot.slane %v6832_v13, 7  ;;  %v357_v23 = vrot.slane %v6838_v15, 7  ;;  %v409_v24 = vrot.slane %v6835_v14, 7  ;;  %v6855_v28 = vadd.f32 %v6814_v3, %v274_v17  ;;  %v279_v44 = vld [vmem:[%s6812_s9 + $0x60] sm:$0xff]  ;;  %v280_v45 = vld [vmem:[%s6812_s9 + $0x68] sm:$0xff]  ;;  %v281_v58 = vld [vmem:[%s6812_s9 + $0x70] sm:$0xff] }
  0x17   : > { %v406_v25 = vsel %vm402_vm1, %v405_v19, %v355_v18  ;;  %v468_v26 = vsel %vm402_vm1, %v355_v18, %v405_v19  ;;  %v411_v39 = vrot.slane %v6852_v27, 7  ;;  %v6876_v42 = vadd.f32 %v6814_v3, %v275_v29  ;;  %v282_v59 = vld [vmem:[%s6812_s9 + $0x78] sm:$0xff]  ;;  %v283_v1 = vld [vmem:[%s6812_s9 + $0x80] sm:$0xff]  ;;  %v284_v2 = vld [vmem:[%s6812_s9 + $0x88] sm:$0xff] }
  0x18   : > { %v6859_v31 = vpack.c.bf16 %v406_v25, %v468_v26  ;;  %v408_v32 = vsel %vm402_vm1, %v407_v22, %v356_v21  ;;  %v469_v33 = vsel %vm402_vm1, %v356_v21, %v407_v22  ;;  %v410_v34 = vsel %vm402_vm1, %v409_v24, %v357_v23  ;;  %v286_v25 = vld [vmem:[%s6812_s9 + $0x98] sm:$0xff]  ;;  %v287_v26 = vld [vmem:[%s6812_s9 + $0xa0] sm:$0xff]  ;;  %v288_v29 = vld [vmem:[%s6812_s9 + $0xa8] sm:$0xff] }
  0x19   : > { %v6865_v36 = vpack.c.bf16 %v408_v32, %v469_v33  ;;  %v470_v37 = vsel %vm402_vm1, %v357_v23, %v409_v24  ;;  %v358_v38 = vrot.slane %v6855_v28, 7  ;;  %v6879_v43 = vadd.f32 %v6814_v3, %v276_v30  ;;  %v285_v24 = vld [vmem:[%s6812_s9 + $0x90] sm:$0xff] }
  0x1a   : > { %5592 = vmatprep.mubr.msk.bf16.mxu0 %vm502_vm2, %v6859_v31  ;;  %v6873_v41 = vpack.c.bf16 %v410_v34, %v470_v37  ;;  %v6892_v48 = vadd.f32 %v6814_v3, %v277_v35  ;;  %v413_v51 = vrot.slane %v6876_v42, 7  ;;  %v6900_v52 = vadd.f32 %v6814_v3, %v278_v40 }
  0x1b   : > { %5593 = vmatmul.mubr.msk.bf16.vlgmr.msra.gmra.mrb[0].mxu0 %vm502_vm2, %v6865_v36  ;;  %v412_v47 = vsel %vm402_vm1, %v411_v39, %v358_v38  ;;  %v471_v49 = vsel %vm402_vm1, %v358_v38, %v411_v39  ;;  %v359_v50 = vrot.slane %v6879_v43, 7  ;;  %v6903_v53 = vadd.f32 %v6814_v3, %v279_v44 }
  0x1c   : > { %5625 = vmatpush3.bf16.msra.mxu0 %v717_v20  ;;  %5596 = vmatprep.mubr.msk.bf16.mxu0 %vm502_vm2, %v6873_v41  ;;  %v6906_v54 = vadd.f32 %v6814_v3, %v280_v45  ;;  %v6912_v57 = vpack.c.bf16 %v412_v47, %v471_v49  ;;  %v360_v61 = vrot.slane %v6900_v52, 7  ;;  %v415_v62 = vrot.slane %v6892_v48, 7 }
  0x1d   : > { %6716 = vmatprep.subr.msk.bf16.mxu0 %vm551_vm0, %v6886_v46  ;;  %v414_v55 = vsel %vm402_vm1, %v413_v51, %v359_v50  ;;  %v472_v56 = vsel %vm402_vm1, %v359_v50, %v413_v51  ;;  %v417_v0 = vrot.slane %v6903_v53, 7  ;;  %v6931_v6 = vadd.f32 %v6814_v3, %v281_v58  ;;  %v289_v51 = vld [vmem:[%s6812_s9 + $0xb0] sm:$0xff]  ;;  %v292_v58 = vld [vmem:[%s6812_s9 + $0xc8] sm:$0xff] }
  0x1e   : > { %v6916_v60 = vpack.c.bf16 %v414_v55, %v472_v56  ;;  %v361_v63 = vrot.slane %v6906_v54, 7  ;;  %v416_v4 = vsel %vm402_vm1, %v415_v62, %v360_v61  ;;  %v473_v5 = vsel %vm402_vm1, %v360_v61, %v415_v62  ;;  %v290_v55 = vld [vmem:[%s6812_s9 + $0xb8] sm:$0xff]  ;;  %v291_v56 = vld [vmem:[%s6812_s9 + $0xc0] sm:$0xff] }
  0x1f   : > { %v6934_v9 = vadd.f32 %v6814_v3, %v282_v59  ;;  %v6939_v16 = vadd.f32 %v6814_v3, %v283_v1  ;;  %v6942_v17 = vadd.f32 %v6814_v3, %v284_v2  ;;  %v6944_v18 = vpack.c.bf16 %v416_v4, %v473_v5 }
  0x20   : > { %v418_v11 = vsel %vm402_vm1, %v417_v0, %v361_v63  ;;  %v474_v12 = vsel %vm402_vm1, %v361_v63, %v417_v0  ;;  %v419_v21 = vrot.slane %v6931_v6, 7  ;;  %v6963_v33 = vadd.f32 %v6814_v3, %v285_v24  ;;  %v294_v24 = vld [vmem:[%s6812_s9 + $0xd8] sm:$0xff] }
  0x21   : > { %v6946_v19 = vpack.c.bf16 %v418_v11, %v474_v12  ;;  %v362_v20 = vrot.slane %v6934_v9, 7  ;;  %v363_v22 = vrot.slane %v6942_v17, 7  ;;  %v421_v23 = vrot.slane %v6939_v16, 7 }
  0x22   : > { %v6966_v34 = vadd.f32 %v6814_v3, %v286_v25  ;;  %v6971_v38 = vadd.f32 %v6814_v3, %v287_v26  ;;  %v6974_v39 = vadd.f32 %v6814_v3, %v288_v29  ;;  %v423_v47 = vrot.slane %v6963_v33, 7  ;;  %v295_v25 = vld [vmem:[%s6812_s9 + $0xe0] sm:$0xff]  ;;  %v296_v26 = vld [vmem:[%s6812_s9 + $0xe8] sm:$0xff] }
  0x23   : > { %5597 = vmatmul.mubr.msk.bf16.gmra.mrb[4].mxu0 %vm502_vm2, %v6912_v57  ;;  %v420_v30 = vsel %vm402_vm1, %v419_v21, %v362_v20  ;;  %v475_v32 = vsel %vm402_vm1, %v362_v20, %v419_v21  ;;  %v422_v35 = vsel %vm402_vm1, %v421_v23, %v363_v22  ;;  %v476_v37 = vsel %vm402_vm1, %v363_v22, %v421_v23  ;;  %v293_v23 = vld [vmem:[%s6812_s9 + $0xd0] sm:$0xff] }
  0x24   : > { %5600 = vmatprep.mubr.msk.bf16.mxu0 %vm502_vm2, %v6916_v60  ;;  %v6976_v40 = vpack.c.bf16 %v420_v30, %v475_v32  ;;  %v6978_v44 = vpack.c.bf16 %v422_v35, %v476_v37  ;;  %v364_v45 = vrot.slane %v6966_v34, 7  ;;  %v365_v49 = vrot.slane %v6974_v39, 7 }
  0x25   : > { %v425_v50 = vrot.slane %v6971_v38, 7  ;;  %v6995_v62 = vadd.f32 %v6814_v3, %v289_v51  ;;  %v6998_v63 = vadd.f32 %v6814_v3, %v290_v55  ;;  %v7003_v2 = vadd.f32 %v6814_v3, %v291_v56 }
  0x26   : > { %v424_v59 = vsel %vm402_vm1, %v423_v47, %v364_v45  ;;  %v477_v61 = vsel %vm402_vm1, %v364_v45, %v423_v47  ;;  %v7006_v4 = vadd.f32 %v6814_v3, %v292_v58  ;;  %v7027_v32 = vadd.f32 %v6814_v3, %v293_v23 }
  0x27   : > { %v426_v0 = vsel %vm402_vm1, %v425_v50, %v365_v49  ;;  %v478_v1 = vsel %vm402_vm1, %v365_v49, %v425_v50  ;;  %v7008_v5 = vpack.c.bf16 %v424_v59, %v477_v61  ;;  %v366_v12 = vrot.slane %v6998_v63, 7  ;;  %v297_v61 = vld [vmem:[%s6812_s9 + $0xf0] sm:$0xff] }
  0x28   : > { %v7010_v11 = vpack.c.bf16 %v426_v0, %v478_v1  ;;  %v427_v20 = vrot.slane %v6995_v62, 7  ;;  %v367_v21 = vrot.slane %v7006_v4, 7  ;;  %v429_v22 = vrot.slane %v7003_v2, 7  ;;  %v298_v0 = vld [vmem:[%s6812_s9 + $0xf8] sm:$0xff] }
  0x29   : > { %v7030_v35 = vadd.f32 %v6814_v3, %v294_v24  ;;  %v7035_v47 = vadd.f32 %v6814_v3, %v295_v25  ;;  %v7038_v49 = vadd.f32 %v6814_v3, %v296_v26  ;;  %v431_v56 = vrot.slane %v7027_v32, 7 }
  0x2a   : > { %v428_v29 = vsel %vm402_vm1, %v427_v20, %v366_v12  ;;  %v479_v30 = vsel %vm402_vm1, %v366_v12, %v427_v20  ;;  %v430_v37 = vsel %vm402_vm1, %v429_v22, %v367_v21  ;;  %v480_v45 = vsel %vm402_vm1, %v367_v21, %v429_v22 }
  0x2b   : > { %5601 = vmatmul.mubr.msk.bf16.gmra.mrb[8].mxu0 %vm502_vm2, %v6944_v18  ;;  %v495_v50 = vpack.c.bf16 %v428_v29, %v479_v30  ;;  %v496_v51 = vpack.c.bf16 %v430_v37, %v480_v45  ;;  %v368_v55 = vrot.slane %v7030_v35, 7  ;;  %v369_v58 = vrot.slane %v7038_v49, 7 }
  0x2c   : > { %5604 = vmatprep.mubr.msk.bf16.mxu0 %vm502_vm2, %v6946_v19  ;;  %v433_v59 = vrot.slane %v7035_v47, 7  ;;  %v7051_v20 = vadd.f32 %v6814_v3, %v297_v61  ;;  %v7054_v21 = vadd.f32 %v6814_v3, %v298_v0  ;;  %v7068_v45 = vpack.c.bf16 %v6823_v8, %v6820_v7 }
  0x2d   : > { %v432_v1 = vsel %vm402_vm1, %v431_v56, %v368_v55  ;;  %v481_v12 = vsel %vm402_vm1, %v368_v55, %v431_v56  ;;  %v883_v55 = vsel %vm551_vm0, %v6886_v46, 0  ;;  %v5007_v56 = vld [vmem:[%s8021_s2 + $0x4] sm:$0xf]  ;;  %v1091_v61 = vpack.c.bf16 %v7006_v4, %v7003_v2 }
  0x2e   : > { %v434_v22 = vsel %vm402_vm1, %v433_v59, %v369_v58  ;;  %v482_v23 = vsel %vm402_vm1, %v369_v58, %v433_v59  ;;  %v497_v24 = vpack.c.bf16 %v432_v1, %v481_v12  ;;  %v354_v26 = vrot.slane %v7054_v21, 7  ;;  %v5024_v58 = vld [vmem:[%s8021_s2 + $0x10] sm:$0xf] }
  0x2f   : > { %v498_v25 = vpack.c.bf16 %v434_v22, %v482_v23  ;;  %v403_v29 = vrot.slane %v7051_v20, 7  ;;  %v1145_v46 = vsel %vm551_vm0, %v5007_v56, 0  ;;  %v1090_v59 = vpack.c.bf16 %v6998_v63, %v6995_v62 }
  0x30   : > { %v1092_v0 = vpack.c.bf16 %v7030_v35, %v7027_v32  ;;  %v1093_v1 = vpack.c.bf16 %v7038_v49, %v7035_v47  ;;  %v1740_v12 = vrot.slane %v6820_v7, 1  ;;  %v1741_v22 = vrot.slane %v6823_v8, 1  ;;  %v5058_v7 = vld [vmem:[%s8021_s2 + $0x8] sm:$0xf] }
  0x31   : > { %v404_v30 = vsel %vm402_vm1, %v403_v29, %v354_v26  ;;  %v467_v37 = vsel %vm402_vm1, %v354_v26, %v403_v29  ;;  %v1916_v8 = vsel %vm551_vm0, %v5058_v7, 0  ;;  %v5075_v29 = vld [vmem:[%s8021_s2 + $0x14] sm:$0xf] }
  0x32   : > { %v483_v3 = vpack.c.bf16 %v404_v30, %v467_v37  ;;  %v1742_v23 = vsel %vm1736_vm3, %v1740_v12, %v1741_v22  ;;  %v1737_v30 = vrot.slane %v7051_v20, 1  ;;  %v1738_v37 = vrot.slane %v7054_v21, 1 }
  0x33   : > { %5605 = vmatmul.mubr.msk.bf16.gmra.mrb[12].mxu0 %vm502_vm2, %v6976_v40 }
  0x34   : > { %5608 = vmatprep.mubr.msk.bf16.mxu0 %vm502_vm2, %v6978_v44 }
  0x3b   : > { %5609 = vmatmul.mubr.msk.bf16.gmra.mrb[16].mxu0 %vm502_vm2, %v7008_v5 }
  0x3c   : > { %5612 = vmatprep.mubr.msk.bf16.mxu0 %vm502_vm2, %v7010_v11 }
  0x43   : > { %5613 = vmatmul.mubr.msk.bf16.gmra.mrb[20].mxu0 %vm502_vm2, %v495_v50 }
  0x44   : > { %5616 = vmatprep.mubr.msk.bf16.mxu0 %vm502_vm2, %v496_v51 }
  0x4b   : > { %5617 = vmatmul.mubr.msk.bf16.gmra.mrb[24].mxu0 %vm502_vm2, %v497_v24 }
  0x4c   : > { %5620 = vmatprep.mubr.msk.bf16.mxu0 %vm502_vm2, %v498_v25 }
  0x53   : > { %5621 = vmatmul.mubr.msk.bf16.gmra.mrb[28].mxu0 %vm502_vm2, %v483_v3 }
  0x54   : > { %5626 = vmatprep.mubr.msk.bf16.mxu0 %vm502_vm2, %v483_v3 }
  0x5b   : > { %5627 = vmatmul.mubr.msk.bf16.vlgmr.msra.gmra.mrb[0].mxu0 %vm502_vm2, %v6859_v31 }
  0x5c   : > { %5659 = vmatpush3.bf16.msra.mxu0 %v883_v55  ;;  %5630 = vmatprep.mubr.msk.bf16.mxu0 %vm502_vm2, %v6865_v36  ;;  %v1833_v55 = vsel %vm1736_vm3, %v1738_v37, %v1737_v30 }
  0x5d   : > { %6717 = vmatprep.subr.msk.bf16.mxu0 %vm551_vm0, %v5007_v56 }
  0x63   : > { %5631 = vmatmul.mubr.msk.bf16.gmra.mrb[4].mxu0 %vm502_vm2, %v6873_v41 }
  0x64   : > { %5634 = vmatprep.mubr.msk.bf16.mxu0 %vm502_vm2, %v6912_v57 }
  0x6b   : > { %5635 = vmatmul.mubr.msk.bf16.gmra.mrb[8].mxu0 %vm502_vm2, %v6916_v60 }
  0x6c   : > { %5638 = vmatprep.mubr.msk.bf16.mxu0 %vm502_vm2, %v6944_v18 }
  0x73   : > { %5639 = vmatmul.mubr.msk.bf16.gmra.mrb[12].mxu0 %vm502_vm2, %v6946_v19 }
  0x74   : > { %5642 = vmatprep.mubr.msk.bf16.mxu0 %vm502_vm2, %v6976_v40 }
  0x7b   : > { %5643 = vmatmul.mubr.msk.bf16.gmra.mrb[16].mxu0 %vm502_vm2, %v6978_v44 }
  0x7c   : > { %5646 = vmatprep.mubr.msk.bf16.mxu0 %vm502_vm2, %v7008_v5 }
  0x83   : > { %5647 = vmatmul.mubr.msk.bf16.gmra.mrb[20].mxu0 %vm502_vm2, %v7010_v11 }
  0x84   : > { %5650 = vmatprep.mubr.msk.bf16.mxu0 %vm502_vm2, %v495_v50 }
  0x8b   : > { %5651 = vmatmul.mubr.msk.bf16.gmra.mrb[24].mxu0 %vm502_vm2, %v496_v51 }
  0x8c   : > { %5654 = vmatprep.mubr.msk.bf16.mxu0 %vm502_vm2, %v497_v24 }
  0x93   : > { %5655 = vmatmul.mubr.msk.bf16.gmra.mrb[28].mxu0 %vm502_vm2, %v498_v25 }
  0x94   : > { %5660 = vmatprep.mubr.msk.bf16.mxu0 %vm502_vm2, %v6865_v36  ;;  %v7134_v36 = vpack.c.bf16 %v7054_v21, %v7051_v20 }
  0x9b   : > { %5661 = vmatmul.mubr.msk.bf16.vlgmr.msra.gmra.mrb[0].mxu0 %vm502_vm2, %v6873_v41  ;;  %v1080_v41 = vpack.c.bf16 %v6832_v13, %v6827_v10 }
  0x9c   : > { %5693 = vmatpush3.bf16.msra.mxu0 %v1145_v46  ;;  %5664 = vmatprep.mubr.msk.bf16.mxu0 %vm502_vm2, %v6912_v57  ;;  %v1343_v57 = vsel %vm551_vm0, %v5024_v58, 0  ;;  %v1743_v46 = vrot.slane %v6827_v10, 1  ;;  %v2114_v10 = vsel %vm551_vm0, %v5075_v29, 0 }
  0x9d   : > { %6718 = vmatprep.subr.msk.bf16.mxu0 %vm551_vm0, %v5024_v58  ;;  %v1744_v58 = vrot.slane %v6832_v13, 1  ;;  %v1749_v13 = vrot.slane %v6852_v27, 1 }
  0x9f   : > { %v1745_v20 = vsel %vm1736_vm3, %v1743_v46, %v1744_v58  ;;  %v1835_v21 = vsel %vm1736_vm3, %v1744_v58, %v1743_v46 }
  0xa3   : > { %5665 = vmatmul.mubr.msk.bf16.gmra.mrb[4].mxu0 %vm502_vm2, %v6916_v60  ;;  %v5041_v60 = vld [vmem:[%s8021_s2 + $0x1c] sm:$0xf] }
  0xa4   : > { %5668 = vmatprep.mubr.msk.bf16.mxu0 %vm502_vm2, %v6944_v18  ;;  %v1082_v18 = vpack.c.bf16 %v6855_v28, %v6852_v27  ;;  %v1541_v26 = vsel %vm551_vm0, %v5041_v60, 0 }
  0xab   : > { %5669 = vmatmul.mubr.msk.bf16.gmra.mrb[8].mxu0 %vm502_vm2, %v6946_v19  ;;  %v1083_v19 = vpack.c.bf16 %v6879_v43, %v6876_v42 }
  0xac   : > { %5672 = vmatprep.mubr.msk.bf16.mxu0 %vm502_vm2, %v6976_v40  ;;  %v1084_v40 = vpack.c.bf16 %v6900_v52, %v6892_v48 }
  0xb3   : > { %5673 = vmatmul.mubr.msk.bf16.gmra.mrb[12].mxu0 %vm502_vm2, %v6978_v44  ;;  %v1085_v44 = vpack.c.bf16 %v6906_v54, %v6903_v53 }
  0xb4   : > { %5676 = vmatprep.mubr.msk.bf16.mxu0 %vm502_vm2, %v7008_v5  ;;  %v1086_v5 = vpack.c.bf16 %v6934_v9, %v6931_v6 }
  0xbb   : > { %5677 = vmatmul.mubr.msk.bf16.gmra.mrb[16].mxu0 %vm502_vm2, %v7010_v11  ;;  %v1087_v11 = vpack.c.bf16 %v6942_v17, %v6939_v16 }
  0xbc   : > { %5680 = vmatprep.mubr.msk.bf16.mxu0 %vm502_vm2, %v495_v50  ;;  %v1088_v50 = vpack.c.bf16 %v6966_v34, %v6963_v33 }
  0xc3   : > { %5681 = vmatmul.mubr.msk.bf16.gmra.mrb[20].mxu0 %vm502_vm2, %v496_v51  ;;  %v1089_v51 = vpack.c.bf16 %v6974_v39, %v6971_v38 }
  0xc4   : > { %5684 = vmatprep.mubr.msk.bf16.mxu0 %vm502_vm2, %v497_v24  ;;  %v1834_v24 = vsel %vm1736_vm3, %v1741_v22, %v1740_v12 }
  0xcb   : > { %5685 = vmatmul.mubr.msk.bf16.gmra.mrb[24].mxu0 %vm502_vm2, %v498_v25  ;;  %v7195_v25 = vpack.c.bf16 %v1834_v24, %v1742_v23  ;;  %v1767_v24 = vrot.slane %v6963_v33, 1  ;;  %v1770_v33 = vrot.slane %v6971_v38, 1 }
  0xcc   : > { %5688 = vmatprep.mubr.msk.bf16.mxu0 %vm502_vm2, %v483_v3  ;;  %v1739_v3 = vsel %vm1736_vm3, %v1737_v30, %v1738_v37  ;;  %v1773_v37 = vrot.slane %v6995_v62, 1  ;;  %v1777_v62 = vrot.slane %v7006_v4, 1  ;;  %v1782_v4 = vrot.slane %v7035_v47, 1  ;;  %v6731_v47 = vld [vmem:[%s8023_s4 + $0x18] sm:$0xff]  }
  0xcd   : > { %v7243_v56 = vpack.c.bf16 %v1833_v55, %v1739_v3  ;;  %v1774_v3 = vrot.slane %v6998_v63, 1  ;;  %v1779_v63 = vrot.slane %v7027_v32, 1  ;;  %v1783_v32 = vrot.slane %v7038_v49, 1  ;;  %5896 = vmatprep.subr.bf16.mxu1 %v6731_v47  ;;  %v6732_v49 = vld [vmem:[%s8023_s4] sm:$0xff]  }
  0xce   : > { %5897 = vmatpush3.bf16.msra.mxu1 %v6731_v47 }
  0xcf   : > { %v1775_v58 = vsel %vm1736_vm3, %v1773_v37, %v1774_v3  ;;  %5930 = vmatprep.subr.bf16.mxu1 %v6732_v49 }
  0xd3   : > { %5689 = vmatmul.mubr.msk.bf16.gmra.mrb[28].mxu0 %vm502_vm2, %v6859_v31  ;;  %v1081_v31 = vpack.c.bf16 %v6838_v15, %v6835_v14 }
  0xd4   : > { %5694 = vmatprep.mubr.msk.bf16.mxu0 %vm502_vm2, %v7134_v36 }
  0xdb   : > { %5695 = vmatmul.mubr.msk.bf16.vlgmr.msra.gmra.mrb[0].mxu0 %vm502_vm2, %v7068_v45 }
  0xdc   : > { %5727 = vmatpush3.bf16.msra.mxu0 %v1343_v57  ;;  %5698 = vmatprep.mubr.msk.bf16.mxu0 %vm502_vm2, %v1080_v41  ;;  %v1747_v57 = vrot.slane %v6838_v15, 1 }
  0xdd   : > { %6719 = vmatprep.subr.msk.bf16.mxu0 %vm551_vm0, %v5041_v60  ;;  %v1750_v60 = vrot.slane %v6855_v28, 1 }
  0xdf   : > { %v1751_v27 = vsel %vm1736_vm3, %v1749_v13, %v1750_v60  ;;  %v1837_v28 = vsel %vm1736_vm3, %v1750_v60, %v1749_v13 }
  0xe3   : > { %5699 = vmatmul.mubr.msk.bf16.gmra.mrb[4].mxu0 %vm502_vm2, %v1081_v31 }
  0xe4   : > { %5702 = vmatprep.mubr.msk.bf16.mxu0 %vm502_vm2, %v1082_v18 }
  0xeb   : > { %5703 = vmatmul.mubr.msk.bf16.gmra.mrb[8].mxu0 %vm502_vm2, %v1083_v19 }
  0xec   : > { %5706 = vmatprep.mubr.msk.bf16.mxu0 %vm502_vm2, %v1084_v40 }
  0xf3   : > { %5707 = vmatmul.mubr.msk.bf16.gmra.mrb[12].mxu0 %vm502_vm2, %v1085_v44 }
  0xf4   : > { %5710 = vmatprep.mubr.msk.bf16.mxu0 %vm502_vm2, %v1086_v5 }
  0xfb   : > { %5711 = vmatmul.mubr.msk.bf16.gmra.mrb[16].mxu0 %vm502_vm2, %v1087_v11 }
  0xfc   : > { %5714 = vmatprep.mubr.msk.bf16.mxu0 %vm502_vm2, %v1088_v50 }
 0x103   : > { %5715 = vmatmul.mubr.msk.bf16.gmra.mrb[20].mxu0 %vm502_vm2, %v1089_v51 }
 0x104   : > { %5718 = vmatprep.mubr.msk.bf16.mxu0 %vm502_vm2, %v1090_v59 }
 0x10b   : > { %5719 = vmatmul.mubr.msk.bf16.gmra.mrb[24].mxu0 %vm502_vm2, %v1091_v61 }
 0x10c   : > { %5722 = vmatprep.mubr.msk.bf16.mxu0 %vm502_vm2, %v1092_v0 }
 0x113   : > { %5723 = vmatmul.mubr.msk.bf16.gmra.mrb[28].mxu0 %vm502_vm2, %v1093_v1 }
 0x114   : > { %5728 = vmatprep.mubr.msk.bf16.mxu0 %vm502_vm2, %v7068_v45 }
 0x11b   : > { %5729 = vmatmul.mubr.msk.bf16.vlgmr.msra.gmra.mrb[0].mxu0 %vm502_vm2, %v1080_v41 }
 0x11c   : > { %5761 = vmatpush3.bf16.msra.mxu0 %v1541_v26  ;;  %5732 = vmatprep.mubr.msk.bf16.mxu0 %vm502_vm2, %v1081_v31  ;;  %v1768_v26 = vrot.slane %v6966_v34, 1  ;;  %v1771_v34 = vrot.slane %v6974_v39, 1  ;;  %v1776_v39 = vrot.slane %v7003_v2, 1 }
 0x11d   : > { %6720 = vmatprep.subr.msk.bf16.mxu0 %vm551_vm0, %v5058_v7 }
 0x11e   : > { %v1772_v55 = vsel %vm1736_vm3, %v1770_v33, %v1771_v34  ;;  %v1844_v46 = vsel %vm1736_vm3, %v1771_v34, %v1770_v33 }
 0x123   : > { %5733 = vmatmul.mubr.msk.bf16.gmra.mrb[4].mxu0 %vm502_vm2, %v1082_v18 }
 0x124   : > { %5736 = vmatprep.mubr.msk.bf16.mxu0 %vm502_vm2, %v1083_v19 }
 0x12b   : > { %5737 = vmatmul.mubr.msk.bf16.gmra.mrb[8].mxu0 %vm502_vm2, %v1084_v40 }
 0x12c   : > { %5740 = vmatprep.mubr.msk.bf16.mxu0 %vm502_vm2, %v1085_v44 }
 0x133   : > { %5741 = vmatmul.mubr.msk.bf16.gmra.mrb[12].mxu0 %vm502_vm2, %v1086_v5 }
 0x134   : > { %5744 = vmatprep.mubr.msk.bf16.mxu0 %vm502_vm2, %v1087_v11 }
 0x13b   : > { %5745 = vmatmul.mubr.msk.bf16.gmra.mrb[16].mxu0 %vm502_vm2, %v1088_v50 }
 0x13c   : > { %5748 = vmatprep.mubr.msk.bf16.mxu0 %vm502_vm2, %v1089_v51 }
 0x143   : > { %5749 = vmatmul.mubr.msk.bf16.gmra.mrb[20].mxu0 %vm502_vm2, %v1090_v59 }
 0x144   : > { %5752 = vmatprep.mubr.msk.bf16.mxu0 %vm502_vm2, %v1091_v61 }
 0x14b   : > { %5753 = vmatmul.mubr.msk.bf16.gmra.mrb[24].mxu0 %vm502_vm2, %v1092_v0 }
 0x14c   : > { %5756 = vmatprep.mubr.msk.bf16.mxu0 %vm502_vm2, %v1093_v1 }
 0x153   : > { %5757 = vmatmul.mubr.msk.bf16.gmra.mrb[28].mxu0 %vm502_vm2, %v7134_v36 }
 0x154   : > { %5762 = vmatprep.mubr.msk.bf16.mxu0 %vm502_vm2, %v1080_v41  ;;  %v1746_v41 = vrot.slane %v6835_v14, 1 }
 0x156   : > { %v1748_v14 = vsel %vm1736_vm3, %v1746_v41, %v1747_v57  ;;  %v1836_v15 = vsel %vm1736_vm3, %v1747_v57, %v1746_v41  ;;  %v1780_v41 = vrot.slane %v7030_v35, 1  ;;  %v1778_v57 = vsel %vm1736_vm3, %v1776_v39, %v1777_v62 }
 0x157   : > { %v1784_v35 = vsel %vm1736_vm3, %v1782_v4, %v1783_v32 }
 0x158   : > { %v1781_v13 = vsel %vm1736_vm3, %v1779_v63, %v1780_v41  ;;  %v1847_v60 = vsel %vm1736_vm3, %v1780_v41, %v1779_v63 }
 0x159   : > { %v1863_v2 = vpack.c.bf16 %v1847_v60, %v1781_v13 }
 0x15b   : > { %5763 = vmatmul.mubr.msk.bf16.vlgmr.msra.gmra.mrb[0].mxu0 %vm502_vm2, %v1081_v31  ;;  %v7275_v31 = vpack.c.bf16 %v1836_v15, %v1748_v14  ;;  %v1848_v15 = vsel %vm1736_vm3, %v1783_v32, %v1782_v4 }
 0x15c   : > { %5795 = vmatpush3.bf16.msra.mxu0 %v1916_v8  ;;  %5766 = vmatprep.mubr.msk.bf16.mxu0 %vm502_vm2, %v1082_v18  ;;  %v7277_v18 = vpack.c.bf16 %v1837_v28, %v1751_v27  ;;  %v1864_v27 = vpack.c.bf16 %v1848_v15, %v1784_v35 }
 0x15d   : > { %6721 = vmatprep.subr.msk.bf16.mxu0 %vm551_vm0, %v5075_v29  ;;  %v1769_v29 = vsel %vm1736_vm3, %v1767_v24, %v1768_v26 }
 0x163   : > { %5767 = vmatmul.mubr.msk.bf16.gmra.mrb[4].mxu0 %vm502_vm2, %v1083_v19  ;;  %v1752_v19 = vrot.slane %v6876_v42, 1 }
 0x164   : > { %5770 = vmatprep.mubr.msk.bf16.mxu0 %vm502_vm2, %v1084_v40  ;;  %v1753_v40 = vrot.slane %v6879_v43, 1 }
 0x16b   : > { %5771 = vmatmul.mubr.msk.bf16.gmra.mrb[8].mxu0 %vm502_vm2, %v1085_v44  ;;  %v1755_v44 = vrot.slane %v6892_v48, 1  ;;  %v1758_v48 = vrot.slane %v6903_v53, 1 }
 0x16c   : > { %5774 = vmatprep.mubr.msk.bf16.mxu0 %vm502_vm2, %v1086_v5  ;;  %v1756_v5 = vrot.slane %v6900_v52, 1  ;;  %v1759_v52 = vrot.slane %v6906_v54, 1 }
 0x16e   : > { %v1839_v42 = vsel %vm1736_vm3, %v1756_v5, %v1755_v44  ;;  %v1840_v12 = vsel %vm1736_vm3, %v1759_v52, %v1758_v48 }
 0x173   : > { %5775 = vmatmul.mubr.msk.bf16.gmra.mrb[12].mxu0 %vm502_vm2, %v1087_v11  ;;  %v1754_v11 = vsel %vm1736_vm3, %v1752_v19, %v1753_v40 }
 0x174   : > { %5778 = vmatprep.mubr.msk.bf16.mxu0 %vm502_vm2, %v1088_v50  ;;  %v1838_v50 = vsel %vm1736_vm3, %v1753_v40, %v1752_v19 }
 0x17b   : > { %5779 = vmatmul.mubr.msk.bf16.gmra.mrb[16].mxu0 %vm502_vm2, %v1089_v51  ;;  %v1757_v51 = vsel %vm1736_vm3, %v1755_v44, %v1756_v5 }
 0x17c   : > { %5782 = vmatprep.mubr.msk.bf16.mxu0 %vm502_vm2, %v1090_v59  ;;  %v7291_v59 = vpack.c.bf16 %v1838_v50, %v1754_v11  ;;  %v7293_v43 = vpack.c.bf16 %v1839_v42, %v1757_v51 }
 0x183   : > { %5783 = vmatmul.mubr.msk.bf16.gmra.mrb[20].mxu0 %vm502_vm2, %v1091_v61  ;;  %v1761_v61 = vrot.slane %v6931_v6, 1  ;;  %v1764_v6 = vrot.slane %v6939_v16, 1  ;;  %v1843_v16 = vsel %vm1736_vm3, %v1768_v26, %v1767_v24 }
 0x184   : > { %5786 = vmatprep.mubr.msk.bf16.mxu0 %vm502_vm2, %v1092_v0  ;;  %v1762_v0 = vrot.slane %v6934_v9, 1  ;;  %v1765_v9 = vrot.slane %v6942_v17, 1  ;;  %v1859_v17 = vpack.c.bf16 %v1843_v16, %v1769_v29 }
 0x186   : > { %v1763_v22 = vsel %vm1736_vm3, %v1761_v61, %v1762_v0  ;;  %v1841_v53 = vsel %vm1736_vm3, %v1762_v0, %v1761_v61  ;;  %v1766_v7 = vsel %vm1736_vm3, %v1764_v6, %v1765_v9  ;;  %v1842_v8 = vsel %vm1736_vm3, %v1765_v9, %v1764_v6 }
 0x187   : > { %v7309_v54 = vpack.c.bf16 %v1841_v53, %v1763_v22  ;;  %v1858_v30 = vpack.c.bf16 %v1842_v8, %v1766_v7 }
 0x18b   : > { %5787 = vmatmul.mubr.msk.bf16.gmra.mrb[24].mxu0 %vm502_vm2, %v1093_v1  ;;  %v1760_v1 = vsel %vm1736_vm3, %v1758_v48, %v1759_v52 }
 0x18c   : > { %5790 = vmatprep.mubr.msk.bf16.mxu0 %vm502_vm2, %v7134_v36  ;;  %v7253_v36 = vpack.c.bf16 %v1835_v21, %v1745_v20  ;;  %v7307_v23 = vpack.c.bf16 %v1840_v12, %v1760_v1  ;;  %v1845_v20 = vsel %vm1736_vm3, %v1774_v3, %v1773_v37  ;;  %v1860_v21 = vpack.c.bf16 %v1844_v46, %v1772_v55 }
 0x18d   : > { %v1861_v38 = vpack.c.bf16 %v1845_v20, %v1775_v58 }
 0x193   : > { %5791 = vmatmul.mubr.msk.bf16.gmra.mrb[28].mxu0 %vm502_vm2, %v7068_v45  ;;  %v7263_v45 = vld [vmem:[%s8021_s2 + $0x20] sm:$0xf] }
 0x194   : > { %5796 = vmatprep.mubr.msk.bf16.mxu0 %vm502_vm2, %v7243_v56  ;;  %v2312_v28 = vsel %vm551_vm0, %v7263_v45, 0 }
 0x19b   : > { %5797 = vmatmul.mubr.msk.bf16.vlgmr.msra.gmra.mrb[0].mxu0 %vm502_vm2, %v7195_v25 }
 0x19c   : > { %5829 = vmatpush3.bf16.msra.mxu0 %v2114_v10  ;;  %5800 = vmatprep.mubr.msk.bf16.mxu0 %vm502_vm2, %v7253_v36  ;;  %v1846_v10 = vsel %vm1736_vm3, %v1777_v62, %v1776_v39 }
 0x19d   : > { %6722 = vmatprep.subr.msk.bf16.mxu0 %vm551_vm0, %v7263_v45  ;;  %v1862_v14 = vpack.c.bf16 %v1846_v10, %v1778_v57 }
 0x1a3   : > { %5801 = vmatmul.mubr.msk.bf16.gmra.mrb[4].mxu0 %vm502_vm2, %v7275_v31 }
 0x1a4   : > { %5804 = vmatprep.mubr.msk.bf16.mxu0 %vm502_vm2, %v7277_v18 }
 0x1ab   : > { %5805 = vmatmul.mubr.msk.bf16.gmra.mrb[8].mxu0 %vm502_vm2, %v7291_v59 }
 0x1ac   : > { %5808 = vmatprep.mubr.msk.bf16.mxu0 %vm502_vm2, %v7293_v43 }
 0x1b3   : > { %5809 = vmatmul.mubr.msk.bf16.gmra.mrb[12].mxu0 %vm502_vm2, %v7307_v23 }
 0x1b4   : > { %5812 = vmatprep.mubr.msk.bf16.mxu0 %vm502_vm2, %v7309_v54 }
 0x1bb   : > { %5813 = vmatmul.mubr.msk.bf16.gmra.mrb[16].mxu0 %vm502_vm2, %v1858_v30 }
 0x1bc   : > { %5816 = vmatprep.mubr.msk.bf16.mxu0 %vm502_vm2, %v1859_v17 }
 0x1c3   : > { %5817 = vmatmul.mubr.msk.bf16.gmra.mrb[20].mxu0 %vm502_vm2, %v1860_v21 }
 0x1c4   : > { %5820 = vmatprep.mubr.msk.bf16.mxu0 %vm502_vm2, %v1861_v38 }
 0x1cb   : > { %5821 = vmatmul.mubr.msk.bf16.gmra.mrb[24].mxu0 %vm502_vm2, %v1862_v14 }
 0x1cc   : > { %5824 = vmatprep.mubr.msk.bf16.mxu0 %vm502_vm2, %v1863_v2 }
 0x1d3   : > { %5825 = vmatmul.mubr.msk.bf16.gmra.mrb[28].mxu0 %vm502_vm2, %v1864_v27 }
 0x1d4   : > { %5830 = vmatprep.mubr.msk.bf16.mxu0 %vm502_vm2, %v7195_v25 }
 0x1db   : > { %5831 = vmatmul.mubr.msk.bf16.vlgmr.msra.gmra.mrb[0].mxu0 %vm502_vm2, %v7253_v36 }
 0x1dc   : > { %5863 = vmatpush3.bf16.msra.mxu0 %v2312_v28  ;;  %5834 = vmatprep.mubr.msk.bf16.mxu0 %vm502_vm2, %v7275_v31 }
 0x1e3   : > { %5835 = vmatmul.mubr.msk.bf16.gmra.mrb[4].mxu0 %vm502_vm2, %v7277_v18 }
 0x1e4   : > { %5838 = vmatprep.mubr.msk.bf16.mxu0 %vm502_vm2, %v7291_v59 }
 0x1eb   : > { %5839 = vmatmul.mubr.msk.bf16.gmra.mrb[8].mxu0 %vm502_vm2, %v7293_v43 }
 0x1ec   : > { %5842 = vmatprep.mubr.msk.bf16.mxu0 %vm502_vm2, %v7307_v23 }
 0x1f3   : > { %5843 = vmatmul.mubr.msk.bf16.gmra.mrb[12].mxu0 %vm502_vm2, %v7309_v54 }
 0x1f4   : > { %5846 = vmatprep.mubr.msk.bf16.mxu0 %vm502_vm2, %v1858_v30 }
 0x1fb   : > { %5847 = vmatmul.mubr.msk.bf16.gmra.mrb[16].mxu0 %vm502_vm2, %v1859_v17 }
 0x1fc   : > { %5850 = vmatprep.mubr.msk.bf16.mxu0 %vm502_vm2, %v1860_v21 }
 0x203   : > { %5851 = vmatmul.mubr.msk.bf16.gmra.mrb[20].mxu0 %vm502_vm2, %v1861_v38 }
 0x204   : > { %5854 = vmatprep.mubr.msk.bf16.mxu0 %vm502_vm2, %v1862_v14 }
 0x20b   : > { %5855 = vmatmul.mubr.msk.bf16.gmra.mrb[24].mxu0 %vm502_vm2, %v1863_v2 }
 0x20c   : > { %5858 = vmatprep.mubr.msk.bf16.mxu0 %vm502_vm2, %v1864_v27 }
 0x213   : > { %5859 = vmatmul.mubr.msk.bf16.gmra.mrb[28].mxu0 %vm502_vm2, %v7243_v56 }
 0x214   : > { %5864 = vmatprep.mubr.msk.bf16.mxu0 %vm502_vm2, %v7253_v36  ;;  %v7411_v36 = vld [vmem:[%s8022_s3] ss:$0 sm:$0xff] }
 0x21b   : > { %5865 = vmatmul.mubr.msk.bf16.vlgmr.msra.gmra.mrb[0].mxu0 %vm502_vm2, %v7275_v31 }
 0x21c   : > { %5868 = vmatprep.mubr.msk.bf16.mxu0 %vm502_vm2, %v7277_v18 }
 0x223   : > { %5869 = vmatmul.mubr.msk.bf16.gmra.mrb[4].mxu0 %vm502_vm2, %v7291_v59 }
 0x224   : > { %5872 = vmatprep.mubr.msk.bf16.mxu0 %vm502_vm2, %v7293_v43 }
 0x22b   : > { %5873 = vmatmul.mubr.msk.bf16.gmra.mrb[8].mxu0 %vm502_vm2, %v7307_v23 }
 0x22c   : > { %5876 = vmatprep.mubr.msk.bf16.mxu0 %vm502_vm2, %v7309_v54 }
 0x233   : > { %5877 = vmatmul.mubr.msk.bf16.gmra.mrb[12].mxu0 %vm502_vm2, %v1858_v30 }
 0x234   : > { %5880 = vmatprep.mubr.msk.bf16.mxu0 %vm502_vm2, %v1859_v17 }
 0x23b   : > { %5881 = vmatmul.mubr.msk.bf16.gmra.mrb[16].mxu0 %vm502_vm2, %v1860_v21  ;;  %v7441_v21 = vld [vmem:[%s8023_s4 + $0x30] sm:$0xff]  }
 0x23c   : > { %5884 = vmatprep.mubr.msk.bf16.mxu0 %vm502_vm2, %v1861_v38 }
 0x243   : > { %5885 = vmatmul.mubr.msk.bf16.gmra.mrb[20].mxu0 %vm502_vm2, %v1862_v14 }
 0x244   : > { %5888 = vmatprep.mubr.msk.bf16.mxu0 %vm502_vm2, %v1863_v2 }
 0x24b   : > { %5889 = vmatmul.mubr.msk.bf16.gmra.mrb[24].mxu0 %vm502_vm2, %v1864_v27 }
 0x24c   : > { %5892 = vmatprep.mubr.msk.bf16.mxu0 %vm502_vm2, %v7243_v56 }
 0x253   : > { %5893 = vmatmul.mubr.msk.bf16.gmra.mrb[28].mxu0 %vm502_vm2, %v7195_v25 }
 0x2ee   : > { %v5866_v56 = vpop.f32.mrb[0].mxu0 }
 0x2ef   : > { %v2516_v45 = vadd.f32 %v5866_v56, %v7411_v36  ;;  %v2348_v25 = vpop.f32.mrb[1].mxu0 }
 0x2f0   : > { %v2514_v31 = vadd.f32 %v7411_v36, %v2348_v25  ;;  %v5867_v18 = vpop.f32.mrb[2].mxu0 }
 0x2f1   : > { %v2548_v19 = vmax.f32 %v2516_v45, 0.0  ;;  %v2517_v40 = vadd.f32 %v5867_v18, %v7411_v36  ;;  %v2351_v44 = vpop.f32.mrb[3].mxu0 }
 0x2f2   : > { %v2546_v5 = vmax.f32 %v2514_v31, 0.0  ;;  %v2515_v11 = vadd.f32 %v7411_v36, %v2351_v44 }
 0x2f3   : > { %v2549_v50 = vmax.f32 %v2517_v40, 0.0  ;;  %v2646_v51 = vrot.slane %v2548_v19, 7  ;;  %v4004_v42 = vrot.slane %v2548_v19, 1 }
 0x2f4   : > { %v2547_v59 = vmax.f32 %v2515_v11, 0.0  ;;  %v2644_v43 = vrot.slane %v2546_v5, 7  ;;  %v4001_v0 = vrot.slane %v2546_v5, 1 }
 0x2f5   : > { %v2596_v48 = vrot.slane %v2549_v50, 7  ;;  %v7417_v52 = vpack.c.bf16 %v2549_v50, %v2548_v19  ;;  %v4005_v61 = vrot.slane %v2549_v50, 1 }
 0x2f6   : > { %v2595_v1 = vrot.slane %v2547_v59, 7  ;;  %v7419_v12 = vpack.c.bf16 %v2547_v59, %v2546_v5  ;;  %v4002_v22 = vrot.slane %v2547_v59, 1  ;;  %v5870_v53 = vpop.f32.mrb[4].mxu0 }
 0x2f7   : > { %v2520_v23 = vadd.f32 %v5870_v53, %v7411_v36  ;;  %v2364_v54 = vpop.f32.mrb[5].mxu0  ;;  %v2647_v6 = vsel %vm402_vm1, %v2646_v51, %v2596_v48  ;;  %v2708_v9 = vsel %vm402_vm1, %v2596_v48, %v2646_v51  ;;  %v4006_v24 = vsel %vm1736_vm3, %v4004_v42, %v4005_v61 }
 0x2f8   : > { %v4003_v26 = vsel %vm1736_vm3, %v4001_v0, %v4002_v22  ;;  %v4095_v7 = vsel %vm1736_vm3, %v4002_v22, %v4001_v0  ;;  %v2518_v8 = vadd.f32 %v7411_v36, %v2364_v54  ;;  %v5871_v29 = vpop.f32.mrb[6].mxu0  ;;  %v2645_v16 = vsel %vm402_vm1, %v2644_v43, %v2595_v1 }
 0x2f9   : > { %v7429_v30 = vpack.c.bf16 %v4095_v7, %v4003_v26  ;;  %v2552_v17 = vmax.f32 %v2520_v23, 0.0  ;;  %v2521_v33 = vadd.f32 %v5871_v29, %v7411_v36  ;;  %v2367_v34 = vpop.f32.mrb[7].mxu0  ;;  %v2707_v37 = vsel %vm402_vm1, %v2595_v1, %v2644_v43 }
 0x2fa   : > { %v2550_v3 = vmax.f32 %v2518_v8, 0.0  ;;  %v2519_v55 = vadd.f32 %v7411_v36, %v2367_v34  ;;  %v7434_v46 = vpack.c.bf16 %v2645_v16, %v2707_v37  ;;  %v7436_v58 = vpack.c.bf16 %v2647_v6, %v2708_v9 }
 0x2fb   : > { %v2553_v20 = vmax.f32 %v2521_v33, 0.0  ;;  %v4096_v38 = vsel %vm1736_vm3, %v4005_v61, %v4004_v42  ;;  %v2650_v39 = vrot.slane %v2552_v17, 7  ;;  %v4010_v62 = vrot.slane %v2552_v17, 1 }
 0x2fc   : > { %v2551_v63 = vmax.f32 %v2519_v55, 0.0  ;;  %5898 = vmatprep.mubr.msk.bf16.mxu1 %vm2749_vm4, %v7434_v46  ;;  %v7446_v41 = vpack.c.bf16 %v4096_v38, %v4006_v24  ;;  %v2648_v57 = vrot.slane %v2550_v3, 7  ;;  %v4007_v14 = vrot.slane %v2550_v3, 1 }
 0x2fd   : > { %v2598_v10 = vrot.slane %v2553_v20, 7  ;;  %v7448_v13 = vpack.c.bf16 %v2553_v20, %v2552_v17  ;;  %v4011_v60 = vrot.slane %v2553_v20, 1  ;;  %5899 = vmatmul.mubr.msk.bf16.vlgmr.msra.gmra.mrb[0].mxu1 %vm2749_vm4, %v7436_v58 }
 0x2fe   : > { %v2597_v2 = vrot.slane %v2551_v63, 7  ;;  %v7452_v4 = vpack.c.bf16 %v2551_v63, %v2550_v3  ;;  %v4008_v32 = vrot.slane %v2551_v63, 1  ;;  %5931 = vmatpush3.bf16.msra.mxu1 %v6732_v49  ;;  %v5874_v35 = vpop.f32.mrb[8].mxu0 }
 0x2ff   : > { %v2524_v15 = vadd.f32 %v5874_v35, %v7411_v36  ;;  %v2380_v27 = vpop.f32.mrb[9].mxu0  ;;  %v2651_v28 = vsel %vm402_vm1, %v2650_v39, %v2598_v10  ;;  %v2710_v47 = vsel %vm402_vm1, %v2598_v10, %v2650_v39  ;;  %5964 = vmatprep.subr.bf16.mxu1 %v7441_v21  ;;  %v4012_v56 = vsel %vm1736_vm3, %v4010_v62, %v4011_v60 }
 0x300   : > { %v2522_v45 = vadd.f32 %v7411_v36, %v2380_v27  ;;  %v5875_v25 = vpop.f32.mrb[10].mxu0  ;;  %v2649_v31 = vsel %vm402_vm1, %v2648_v57, %v2597_v2  ;;  %v2709_v18 = vsel %vm402_vm1, %v2597_v2, %v2648_v57  ;;  %v7462_v49 = vpack.c.bf16 %v2651_v28, %v2710_v47 }
 0x301   : > { %v2556_v19 = vmax.f32 %v2524_v15, 0.0  ;;  %v2525_v40 = vadd.f32 %v5875_v25, %v7411_v36  ;;  %v2383_v44 = vpop.f32.mrb[11].mxu0  ;;  %v7465_v5 = vpack.c.bf16 %v2649_v31, %v2709_v18  ;;  %v4009_v11 = vsel %vm1736_vm3, %v4007_v14, %v4008_v32 }
 0x302   : > { %v2554_v50 = vmax.f32 %v2522_v45, 0.0  ;;  %v2523_v51 = vadd.f32 %v7411_v36, %v2383_v44  ;;  %v4097_v42 = vsel %vm1736_vm3, %v4008_v32, %v4007_v14  ;;  %v4098_v59 = vsel %vm1736_vm3, %v4011_v60, %v4010_v62 }
 0x303   : > { %v2557_v43 = vmax.f32 %v2525_v40, 0.0  ;;  %5902 = vmatprep.mubr.msk.bf16.mxu1 %vm2749_vm4, %v7465_v5  ;;  %v7473_v48 = vpack.c.bf16 %v4097_v42, %v4009_v11  ;;  %v2654_v61 = vrot.slane %v2556_v19, 7  ;;  %v4016_v0 = vrot.slane %v2556_v19, 1 }
 0x304   : > { %v2555_v1 = vmax.f32 %v2523_v51, 0.0  ;;  %v7475_v22 = vpack.c.bf16 %v4098_v59, %v4012_v56  ;;  %v2652_v53 = vrot.slane %v2554_v50, 7  ;;  %v4013_v9 = vrot.slane %v2554_v50, 1 }
 0x305   : > { %v2600_v23 = vrot.slane %v2557_v43, 7  ;;  %v7477_v54 = vpack.c.bf16 %v2557_v43, %v2556_v19  ;;  %v4017_v6 = vrot.slane %v2557_v43, 1  ;;  %5903 = vmatmul.mubr.msk.bf16.gmra.mrb[4].mxu1 %vm2749_vm4, %v7462_v49 }
 0x306   : > { %v2599_v24 = vrot.slane %v2555_v1, 7  ;;  %v7481_v26 = vpack.c.bf16 %v2555_v1, %v2554_v50  ;;  %v4014_v7 = vrot.slane %v2555_v1, 1  ;;  %v5878_v8 = vpop.f32.mrb[12].mxu0 }
 0x307   : > { %v2528_v29 = vadd.f32 %v5878_v8, %v7411_v36  ;;  %v2396_v16 = vpop.f32.mrb[13].mxu0  ;;  %v2655_v17 = vsel %vm402_vm1, %v2654_v61, %v2600_v23  ;;  %v2712_v33 = vsel %vm402_vm1, %v2600_v23, %v2654_v61  ;;  %v4018_v34 = vsel %vm1736_vm3, %v4016_v0, %v4017_v6 }
 0x308   : > { %v2526_v37 = vadd.f32 %v7411_v36, %v2396_v16  ;;  %v5879_v3 = vpop.f32.mrb[14].mxu0  ;;  %v2653_v55 = vsel %vm402_vm1, %v2652_v53, %v2599_v24  ;;  %v2711_v20 = vsel %vm402_vm1, %v2599_v24, %v2652_v53  ;;  %v7490_v38 = vpack.c.bf16 %v2655_v17, %v2712_v33 }
 0x309   : > { %v2560_v39 = vmax.f32 %v2528_v29, 0.0  ;;  %v2529_v62 = vadd.f32 %v5879_v3, %v7411_v36  ;;  %v2399_v63 = vpop.f32.mrb[15].mxu0  ;;  %v7493_v57 = vpack.c.bf16 %v2653_v55, %v2711_v20  ;;  %v4015_v10 = vsel %vm1736_vm3, %v4013_v9, %v4014_v7 }
 0x30a   : > { %v2558_v60 = vmax.f32 %v2526_v37, 0.0  ;;  %v2527_v14 = vadd.f32 %v7411_v36, %v2399_v63  ;;  %v4099_v2 = vsel %vm1736_vm3, %v4014_v7, %v4013_v9  ;;  %v4100_v32 = vsel %vm1736_vm3, %v4017_v6, %v4016_v0 }
 0x30b   : > { %v2561_v35 = vmax.f32 %v2529_v62, 0.0  ;;  %5906 = vmatprep.mubr.msk.bf16.mxu1 %vm2749_vm4, %v7493_v57  ;;  %v7501_v15 = vpack.c.bf16 %v4099_v2, %v4015_v10  ;;  %v2658_v27 = vrot.slane %v2560_v39, 7  ;;  %v4022_v28 = vrot.slane %v2560_v39, 1 }
 0x30c   : > { %v2559_v47 = vmax.f32 %v2527_v14, 0.0  ;;  %v7503_v56 = vpack.c.bf16 %v4100_v32, %v4018_v34  ;;  %v2656_v45 = vrot.slane %v2558_v60, 7  ;;  %v4019_v19 = vrot.slane %v2558_v60, 1 }
 0x30d   : > { %v2602_v25 = vrot.slane %v2561_v35, 7  ;;  %v7505_v31 = vpack.c.bf16 %v2561_v35, %v2560_v39  ;;  %v4023_v18 = vrot.slane %v2561_v35, 1  ;;  %5907 = vmatmul.mubr.msk.bf16.gmra.mrb[8].mxu1 %vm2749_vm4, %v7490_v38 }
 0x30e   : > { %v2601_v40 = vrot.slane %v2559_v47, 7  ;;  %v7509_v44 = vpack.c.bf16 %v2559_v47, %v2558_v60  ;;  %v4020_v11 = vrot.slane %v2559_v47, 1  ;;  %v5882_v50 = vpop.f32.mrb[16].mxu0 }
 0x30f   : > { %v2532_v51 = vadd.f32 %v5882_v50, %v7411_v36  ;;  %v2412_v42 = vpop.f32.mrb[17].mxu0  ;;  %v2659_v59 = vsel %vm402_vm1, %v2658_v27, %v2602_v25  ;;  %v2714_v43 = vsel %vm402_vm1, %v2602_v25, %v2658_v27  ;;  %v4024_v61 = vsel %vm1736_vm3, %v4022_v28, %v4023_v18 }
 0x310   : > { %v2530_v0 = vadd.f32 %v7411_v36, %v2412_v42  ;;  %v5883_v1 = vpop.f32.mrb[18].mxu0  ;;  %v2657_v53 = vsel %vm402_vm1, %v2656_v45, %v2601_v40  ;;  %v2713_v23 = vsel %vm402_vm1, %v2601_v40, %v2656_v45  ;;  %v7518_v6 = vpack.c.bf16 %v2659_v59, %v2714_v43 }
 0x311   : > { %v2564_v9 = vmax.f32 %v2532_v51, 0.0  ;;  %v2533_v24 = vadd.f32 %v5883_v1, %v7411_v36  ;;  %v2415_v7 = vpop.f32.mrb[19].mxu0  ;;  %v7521_v8 = vpack.c.bf16 %v2657_v53, %v2713_v23  ;;  %v4021_v29 = vsel %vm1736_vm3, %v4019_v19, %v4020_v11 }
 0x312   : > { %v2562_v16 = vmax.f32 %v2530_v0, 0.0  ;;  %v2531_v17 = vadd.f32 %v7411_v36, %v2415_v7  ;;  %v4101_v33 = vsel %vm1736_vm3, %v4020_v11, %v4019_v19  ;;  %v4102_v34 = vsel %vm1736_vm3, %v4023_v18, %v4022_v28 }
 0x313   : > { %v2565_v37 = vmax.f32 %v2533_v24, 0.0  ;;  %5910 = vmatprep.mubr.msk.bf16.mxu1 %vm2749_vm4, %v7521_v8  ;;  %v7529_v3 = vpack.c.bf16 %v4101_v33, %v4021_v29  ;;  %v2662_v55 = vrot.slane %v2564_v9, 7  ;;  %v4028_v20 = vrot.slane %v2564_v9, 1 }
 0x314   : > { %v2563_v39 = vmax.f32 %v2531_v17, 0.0  ;;  %v7531_v62 = vpack.c.bf16 %v4102_v34, %v4024_v61  ;;  %v2660_v63 = vrot.slane %v2562_v16, 7  ;;  %v4025_v2 = vrot.slane %v2562_v16, 1 }
 0x315   : > { %v2604_v10 = vrot.slane %v2565_v37, 7  ;;  %v7533_v60 = vpack.c.bf16 %v2565_v37, %v2564_v9  ;;  %v4029_v14 = vrot.slane %v2565_v37, 1  ;;  %5911 = vmatmul.mubr.msk.bf16.gmra.mrb[12].mxu1 %vm2749_vm4, %v7518_v6 }
 0x316   : > { %v2603_v32 = vrot.slane %v2563_v39, 7  ;;  %v7537_v35 = vpack.c.bf16 %v2563_v39, %v2562_v16  ;;  %v4026_v27 = vrot.slane %v2563_v39, 1  ;;  %v5886_v28 = vpop.f32.mrb[20].mxu0 }
 0x317   : > { %v2536_v47 = vadd.f32 %v5886_v28, %v7411_v36  ;;  %v2428_v45 = vpop.f32.mrb[21].mxu0  ;;  %v2663_v25 = vsel %vm402_vm1, %v2662_v55, %v2604_v10  ;;  %v2716_v18 = vsel %vm402_vm1, %v2604_v10, %v2662_v55  ;;  %v4030_v19 = vsel %vm1736_vm3, %v4028_v20, %v4029_v14 }
 0x318   : > { %v2534_v40 = vadd.f32 %v7411_v36, %v2428_v45  ;;  %v5887_v11 = vpop.f32.mrb[22].mxu0  ;;  %v2661_v50 = vsel %vm402_vm1, %v2660_v63, %v2603_v32  ;;  %v2715_v51 = vsel %vm402_vm1, %v2603_v32, %v2660_v63  ;;  %v7546_v42 = vpack.c.bf16 %v2663_v25, %v2716_v18 }
 0x319   : > { %v2568_v59 = vmax.f32 %v2536_v47, 0.0  ;;  %v2537_v43 = vadd.f32 %v5887_v11, %v7411_v36  ;;  %v2431_v61 = vpop.f32.mrb[23].mxu0  ;;  %v7549_v0 = vpack.c.bf16 %v2661_v50, %v2715_v51  ;;  %v4027_v1 = vsel %vm1736_vm3, %v4025_v2, %v4026_v27 }
 0x31a   : > { %v2566_v53 = vmax.f32 %v2534_v40, 0.0  ;;  %v2535_v23 = vadd.f32 %v7411_v36, %v2431_v61  ;;  %v4103_v9 = vsel %vm1736_vm3, %v4026_v27, %v4025_v2  ;;  %v4104_v24 = vsel %vm1736_vm3, %v4029_v14, %v4028_v20 }
 0x31b   : > { %v2569_v7 = vmax.f32 %v2537_v43, 0.0  ;;  %5914 = vmatprep.mubr.msk.bf16.mxu1 %vm2749_vm4, %v7549_v0  ;;  %v7557_v29 = vpack.c.bf16 %v4103_v9, %v4027_v1  ;;  %v2666_v16 = vrot.slane %v2568_v59, 7  ;;  %v4034_v17 = vrot.slane %v2568_v59, 1 }
 0x31c   : > { %v2567_v33 = vmax.f32 %v2535_v23, 0.0  ;;  %v7559_v34 = vpack.c.bf16 %v4104_v24, %v4030_v19  ;;  %v2664_v37 = vrot.slane %v2566_v53, 7  ;;  %v4031_v20 = vrot.slane %v2566_v53, 1 }
 0x31d   : > { %v2606_v55 = vrot.slane %v2569_v7, 7  ;;  %v7561_v39 = vpack.c.bf16 %v2569_v7, %v2568_v59  ;;  %v4035_v63 = vrot.slane %v2569_v7, 1  ;;  %5915 = vmatmul.mubr.msk.bf16.gmra.mrb[16].mxu1 %vm2749_vm4, %v7546_v42 }
 0x31e   : > { %v2605_v10 = vrot.slane %v2567_v33, 7  ;;  %v7565_v14 = vpack.c.bf16 %v2567_v33, %v2566_v53  ;;  %v4032_v2 = vrot.slane %v2567_v33, 1  ;;  %v5890_v32 = vpop.f32.mrb[24].mxu0 }
 0x31f   : > { %v2540_v27 = vadd.f32 %v5890_v32, %v7411_v36  ;;  %v2444_v28 = vpop.f32.mrb[25].mxu0  ;;  %v2667_v47 = vsel %vm402_vm1, %v2666_v16, %v2606_v55  ;;  %v2718_v45 = vsel %vm402_vm1, %v2606_v55, %v2666_v16  ;;  %v4036_v25 = vsel %vm1736_vm3, %v4034_v17, %v4035_v63 }
 0x320   : > { %v2538_v18 = vadd.f32 %v7411_v36, %v2444_v28  ;;  %v5891_v19 = vpop.f32.mrb[26].mxu0  ;;  %v2665_v40 = vsel %vm402_vm1, %v2664_v37, %v2605_v10  ;;  %v2717_v11 = vsel %vm402_vm1, %v2605_v10, %v2664_v37  ;;  %v7574_v50 = vpack.c.bf16 %v2667_v47, %v2718_v45 }
 0x321   : > { %v2572_v51 = vmax.f32 %v2540_v27, 0.0  ;;  %v2541_v59 = vadd.f32 %v5891_v19, %v7411_v36  ;;  %v2447_v43 = vpop.f32.mrb[27].mxu0  ;;  %v7577_v61 = vpack.c.bf16 %v2665_v40, %v2717_v11  ;;  %v4033_v1 = vsel %vm1736_vm3, %v4031_v20, %v4032_v2 }
 0x322   : > { %v2570_v53 = vmax.f32 %v2538_v18, 0.0  ;;  %v2539_v23 = vadd.f32 %v7411_v36, %v2447_v43  ;;  %v4105_v9 = vsel %vm1736_vm3, %v4032_v2, %v4031_v20  ;;  %v4106_v24 = vsel %vm1736_vm3, %v4035_v63, %v4034_v17 }
 0x323   : > { %v2573_v7 = vmax.f32 %v2541_v59, 0.0  ;;  %5918 = vmatprep.mubr.msk.bf16.mxu1 %vm2749_vm4, %v7577_v61  ;;  %v7585_v16 = vpack.c.bf16 %v4105_v9, %v4033_v1  ;;  %v2670_v33 = vrot.slane %v2572_v51, 7  ;;  %v4040_v37 = vrot.slane %v2572_v51, 1 }
 0x324   : > { %v2571_v55 = vmax.f32 %v2539_v23, 0.0  ;;  %v7587_v10 = vpack.c.bf16 %v4106_v24, %v4036_v25  ;;  %v2668_v32 = vrot.slane %v2570_v53, 7  ;;  %v4037_v17 = vrot.slane %v2570_v53, 1 }
 0x325   : > { %v2608_v27 = vrot.slane %v2573_v7, 7  ;;  %v7589_v28 = vpack.c.bf16 %v2573_v7, %v2572_v51  ;;  %v4041_v47 = vrot.slane %v2573_v7, 1  ;;  %5919 = vmatmul.mubr.msk.bf16.gmra.mrb[20].mxu1 %vm2749_vm4, %v7574_v50 }
 0x326   : > { %8027 = vst [vmem:[#allocation2_spill] sm:$0xff] %v7587_v10  ;;  %v2607_v63 = vrot.slane %v2571_v55, 7  ;;  %v7593_v20 = vpack.c.bf16 %v2571_v55, %v2570_v53  ;;  %v4038_v2 = vrot.slane %v2571_v55, 1  ;;  %v5894_v45 = vpop.f32.mrb[28].mxu0 }
 0x327   : > { %v2544_v18 = vadd.f32 %v5894_v45, %v7411_v36  ;;  %v2460_v19 = vpop.f32.mrb[29].mxu0  ;;  %v2671_v25 = vsel %vm402_vm1, %v2670_v33, %v2608_v27  ;;  %v2720_v40 = vsel %vm402_vm1, %v2608_v27, %v2670_v33  ;;  %v4042_v11 = vsel %vm1736_vm3, %v4040_v37, %v4041_v47 }
 0x328   : > { %v2542_v51 = vadd.f32 %v7411_v36, %v2460_v19  ;;  %v5895_v59 = vpop.f32.mrb[30].mxu0  ;;  %v2669_v43 = vsel %vm402_vm1, %v2668_v32, %v2607_v63  ;;  %v2719_v1 = vsel %vm402_vm1, %v2607_v63, %v2668_v32  ;;  %v7602_v53 = vpack.c.bf16 %v2671_v25, %v2720_v40 }
 0x329   : > { %v2576_v23 = vmax.f32 %v2544_v18, 0.0  ;;  %v2545_v9 = vadd.f32 %v5895_v59, %v7411_v36  ;;  %v2463_v24 = vpop.f32.mrb[31].mxu0  ;;  %v7605_v7 = vpack.c.bf16 %v2669_v43, %v2719_v1  ;;  %v4039_v55 = vsel %vm1736_vm3, %v4037_v17, %v4038_v2 }
 0x32a   : > { %v2574_v33 = vmax.f32 %v2542_v51, 0.0  ;;  %v2543_v27 = vadd.f32 %v7411_v36, %v2463_v24  ;;  %v4107_v45 = vsel %vm1736_vm3, %v4038_v2, %v4037_v17  ;;  %v4108_v19 = vsel %vm1736_vm3, %v4041_v47, %v4040_v37 }
 0x32b   : > { %v2577_v10 = vmax.f32 %v2545_v9, 0.0  ;;  %5922 = vmatprep.mubr.msk.bf16.mxu1 %vm2749_vm4, %v7605_v7  ;;  %v7613_v32 = vpack.c.bf16 %v4107_v45, %v4039_v55  ;;  %v2642_v63 = vrot.slane %v2576_v23, 7  ;;  %v3998_v18 = vrot.slane %v2576_v23, 1 }
 0x32c   : > { %v2575_v25 = vmax.f32 %v2543_v27, 0.0  ;;  %v7615_v40 = vpack.c.bf16 %v4108_v19, %v4042_v11  ;;  %v2672_v59 = vrot.slane %v2574_v33, 7  ;;  %v4043_v37 = vrot.slane %v2574_v33, 1 }
 0x32d   : > { %v2594_v43 = vrot.slane %v2577_v10, 7  ;;  %v7617_v51 = vpack.c.bf16 %v2577_v10, %v2576_v23  ;;  %v3999_v36 = vrot.slane %v2577_v10, 1  ;;  %5923 = vmatmul.mubr.msk.bf16.gmra.mrb[24].mxu1 %vm2749_vm4, %v7602_v53 }
 0x32e   : > { %v2609_v47 = vrot.slane %v2575_v25, 7  ;;  %v7621_v17 = vpack.c.bf16 %v2575_v25, %v2574_v33  ;;  %v4044_v2 = vrot.slane %v2575_v25, 1 }
 0x32f   : > { %v2643_v1 = vsel %vm402_vm1, %v2642_v63, %v2594_v43  ;;  %v2706_v9 = vsel %vm402_vm1, %v2594_v43, %v2642_v63  ;;  %v4000_v11 = vsel %vm1736_vm3, %v3998_v18, %v3999_v36  ;;  %v4094_v24 = vsel %vm1736_vm3, %v3999_v36, %v3998_v18  ;;  %v6734_v63 = vld [vmem:[%s8023_s4 + $0x8] sm:$0xff]  }
 0x330   : > { %v2673_v23 = vsel %vm402_vm1, %v2672_v59, %v2609_v47  ;;  %v2721_v10 = vsel %vm402_vm1, %v2609_v47, %v2672_v59  ;;  %v2722_v55 = vpack.c.bf16 %v2643_v1, %v2706_v9  ;;  %v7629_v27 = vpack.c.bf16 %v4094_v24, %v4000_v11 }
 0x331   : > { %v2737_v45 = vpack.c.bf16 %v2673_v23, %v2721_v10  ;;  %v4045_v33 = vsel %vm1736_vm3, %v4043_v37, %v4044_v2  ;;  %v4109_v19 = vsel %vm1736_vm3, %v4044_v2, %v4043_v37 }
 0x332   : > { %v7633_v25 = vpack.c.bf16 %v4109_v19, %v4045_v33 }
 0x333   : > { %5926 = vmatprep.mubr.msk.bf16.mxu1 %vm2749_vm4, %v2737_v45 }
 0x335   : > { %5927 = vmatmul.mubr.msk.bf16.gmra.mrb[28].mxu1 %vm2749_vm4, %v2722_v55 }
 0x336   : > { %5932 = vmatprep.mubr.msk.bf16.mxu1 %vm2749_vm4, %v2722_v55 }
 0x33d   : > { %5933 = vmatmul.mubr.msk.bf16.vlgmr.msra.gmra.mrb[0].mxu1 %vm2749_vm4, %v7434_v46 }
 0x33e   : > { %5965 = vmatpush3.bf16.msra.mxu1 %v7441_v21  ;;  %5936 = vmatprep.mubr.msk.bf16.mxu1 %vm2749_vm4, %v7436_v58  ;;  %v6735_v21 = vld [vmem:[%s8023_s4 + $0x20] sm:$0xff]  }
 0x33f   : > { %5998 = vmatprep.subr.bf16.mxu1 %v6734_v63 }
 0x345   : > { %5937 = vmatmul.mubr.msk.bf16.gmra.mrb[4].mxu1 %vm2749_vm4, %v7465_v5 }
 0x346   : > { %5940 = vmatprep.mubr.msk.bf16.mxu1 %vm2749_vm4, %v7462_v49 }
 0x34d   : > { %5941 = vmatmul.mubr.msk.bf16.gmra.mrb[8].mxu1 %vm2749_vm4, %v7493_v57 }
 0x34e   : > { %5944 = vmatprep.mubr.msk.bf16.mxu1 %vm2749_vm4, %v7490_v38 }
 0x355   : > { %5945 = vmatmul.mubr.msk.bf16.gmra.mrb[12].mxu1 %vm2749_vm4, %v7521_v8 }
 0x356   : > { %5948 = vmatprep.mubr.msk.bf16.mxu1 %vm2749_vm4, %v7518_v6 }
 0x35d   : > { %5949 = vmatmul.mubr.msk.bf16.gmra.mrb[16].mxu1 %vm2749_vm4, %v7549_v0 }
 0x35e   : > { %5952 = vmatprep.mubr.msk.bf16.mxu1 %vm2749_vm4, %v7546_v42 }
 0x365   : > { %5953 = vmatmul.mubr.msk.bf16.gmra.mrb[20].mxu1 %vm2749_vm4, %v7577_v61 }
 0x366   : > { %5956 = vmatprep.mubr.msk.bf16.mxu1 %vm2749_vm4, %v7574_v50 }
 0x36d   : > { %5957 = vmatmul.mubr.msk.bf16.gmra.mrb[24].mxu1 %vm2749_vm4, %v7605_v7 }
 0x36e   : > { %5960 = vmatprep.mubr.msk.bf16.mxu1 %vm2749_vm4, %v7602_v53 }
 0x375   : > { %5961 = vmatmul.mubr.msk.bf16.gmra.mrb[28].mxu1 %vm2749_vm4, %v2737_v45 }
 0x376   : > { %5966 = vmatprep.mubr.msk.bf16.mxu1 %vm2749_vm4, %v7436_v58  ;;  %v6736_v58 = vld [vmem:[%s8023_s4 + $0x38] sm:$0xff]  }
 0x37d   : > { %5967 = vmatmul.mubr.msk.bf16.vlgmr.msra.gmra.mrb[0].mxu1 %vm2749_vm4, %v7465_v5 }
 0x37e   : > { %5999 = vmatpush3.bf16.msra.mxu1 %v6734_v63  ;;  %5970 = vmatprep.mubr.msk.bf16.mxu1 %vm2749_vm4, %v7462_v49  ;;  %v6738_v49 = vld [vmem:[%s8023_s4 + $0x28] sm:$0xff]  }
 0x37f   : > { %6032 = vmatprep.subr.bf16.mxu1 %v6735_v21 }
 0x385   : > { %5971 = vmatmul.mubr.msk.bf16.gmra.mrb[4].mxu1 %vm2749_vm4, %v7493_v57 }
 0x386   : > { %5974 = vmatprep.mubr.msk.bf16.mxu1 %vm2749_vm4, %v7490_v38 }
 0x38d   : > { %5975 = vmatmul.mubr.msk.bf16.gmra.mrb[8].mxu1 %vm2749_vm4, %v7521_v8 }
 0x38e   : > { %5978 = vmatprep.mubr.msk.bf16.mxu1 %vm2749_vm4, %v7518_v6 }
 0x395   : > { %5979 = vmatmul.mubr.msk.bf16.gmra.mrb[12].mxu1 %vm2749_vm4, %v7549_v0 }
 0x396   : > { %5982 = vmatprep.mubr.msk.bf16.mxu1 %vm2749_vm4, %v7546_v42 }
 0x39d   : > { %5983 = vmatmul.mubr.msk.bf16.gmra.mrb[16].mxu1 %vm2749_vm4, %v7577_v61 }
 0x39e   : > { %5986 = vmatprep.mubr.msk.bf16.mxu1 %vm2749_vm4, %v7574_v50 }
 0x3a5   : > { %5987 = vmatmul.mubr.msk.bf16.gmra.mrb[20].mxu1 %vm2749_vm4, %v7605_v7 }
 0x3a6   : > { %5990 = vmatprep.mubr.msk.bf16.mxu1 %vm2749_vm4, %v7602_v53 }
 0x3ad   : > { %5991 = vmatmul.mubr.msk.bf16.gmra.mrb[24].mxu1 %vm2749_vm4, %v2737_v45 }
 0x3ae   : > { %5994 = vmatprep.mubr.msk.bf16.mxu1 %vm2749_vm4, %v2722_v55 }
 0x3b5   : > { %5995 = vmatmul.mubr.msk.bf16.gmra.mrb[28].mxu1 %vm2749_vm4, %v7434_v46  ;;  %v6737_v46 = vld [vmem:[%s8023_s4 + $0x10] sm:$0xff]  }
 0x3b6   : > { %6000 = vmatprep.mubr.msk.bf16.mxu1 %vm2749_vm4, %v7617_v51 }
 0x3bd   : > { %6001 = vmatmul.mubr.msk.bf16.vlgmr.msra.gmra.mrb[0].mxu1 %vm2749_vm4, %v7419_v12 }
 0x3be   : > { %6033 = vmatpush3.bf16.msra.mxu1 %v6735_v21  ;;  %6004 = vmatprep.mubr.msk.bf16.mxu1 %vm2749_vm4, %v7417_v52 }
 0x3bf   : > { %6066 = vmatprep.subr.bf16.mxu1 %v6736_v58 }
 0x3c5   : > { %6005 = vmatmul.mubr.msk.bf16.gmra.mrb[4].mxu1 %vm2749_vm4, %v7452_v4 }
 0x3c6   : > { %6008 = vmatprep.mubr.msk.bf16.mxu1 %vm2749_vm4, %v7448_v13 }
 0x3cd   : > { %6009 = vmatmul.mubr.msk.bf16.gmra.mrb[8].mxu1 %vm2749_vm4, %v7481_v26 }
 0x3ce   : > { %6012 = vmatprep.mubr.msk.bf16.mxu1 %vm2749_vm4, %v7477_v54 }
 0x3d5   : > { %6013 = vmatmul.mubr.msk.bf16.gmra.mrb[12].mxu1 %vm2749_vm4, %v7509_v44 }
 0x3d6   : > { %6016 = vmatprep.mubr.msk.bf16.mxu1 %vm2749_vm4, %v7505_v31 }
 0x3dd   : > { %6017 = vmatmul.mubr.msk.bf16.gmra.mrb[16].mxu1 %vm2749_vm4, %v7537_v35 }
 0x3de   : > { %6020 = vmatprep.mubr.msk.bf16.mxu1 %vm2749_vm4, %v7533_v60 }
 0x3e5   : > { %6021 = vmatmul.mubr.msk.bf16.gmra.mrb[20].mxu1 %vm2749_vm4, %v7565_v14 }
 0x3e6   : > { %6024 = vmatprep.mubr.msk.bf16.mxu1 %vm2749_vm4, %v7561_v39 }
 0x3ed   : > { %6025 = vmatmul.mubr.msk.bf16.gmra.mrb[24].mxu1 %vm2749_vm4, %v7593_v20 }
 0x3ee   : > { %6028 = vmatprep.mubr.msk.bf16.mxu1 %vm2749_vm4, %v7589_v28 }
 0x3f5   : > { %6029 = vmatmul.mubr.msk.bf16.gmra.mrb[28].mxu1 %vm2749_vm4, %v7621_v17 }
 0x3f6   : > { %6034 = vmatprep.mubr.msk.bf16.mxu1 %vm2749_vm4, %v7419_v12 }
 0x3fd   : > { %6035 = vmatmul.mubr.msk.bf16.vlgmr.msra.gmra.mrb[0].mxu1 %vm2749_vm4, %v7417_v52 }
 0x3fe   : > { %6067 = vmatpush3.bf16.msra.mxu1 %v6736_v58  ;;  %6038 = vmatprep.mubr.msk.bf16.mxu1 %vm2749_vm4, %v7452_v4 }
 0x3ff   : > { %6100 = vmatprep.subr.bf16.mxu1 %v6737_v46 }
 0x405   : > { %6039 = vmatmul.mubr.msk.bf16.gmra.mrb[4].mxu1 %vm2749_vm4, %v7448_v13 }
 0x406   : > { %6042 = vmatprep.mubr.msk.bf16.mxu1 %vm2749_vm4, %v7481_v26 }
 0x40d   : > { %6043 = vmatmul.mubr.msk.bf16.gmra.mrb[8].mxu1 %vm2749_vm4, %v7477_v54 }
 0x40e   : > { %6046 = vmatprep.mubr.msk.bf16.mxu1 %vm2749_vm4, %v7509_v44 }
 0x415   : > { %6047 = vmatmul.mubr.msk.bf16.gmra.mrb[12].mxu1 %vm2749_vm4, %v7505_v31 }
 0x416   : > { %6050 = vmatprep.mubr.msk.bf16.mxu1 %vm2749_vm4, %v7537_v35 }
 0x41d   : > { %6051 = vmatmul.mubr.msk.bf16.gmra.mrb[16].mxu1 %vm2749_vm4, %v7533_v60 }
 0x41e   : > { %6054 = vmatprep.mubr.msk.bf16.mxu1 %vm2749_vm4, %v7565_v14 }
 0x425   : > { %6055 = vmatmul.mubr.msk.bf16.gmra.mrb[20].mxu1 %vm2749_vm4, %v7561_v39 }
 0x426   : > { %6058 = vmatprep.mubr.msk.bf16.mxu1 %vm2749_vm4, %v7593_v20 }
 0x42d   : > { %6059 = vmatmul.mubr.msk.bf16.gmra.mrb[24].mxu1 %vm2749_vm4, %v7589_v28 }
 0x42e   : > { %6062 = vmatprep.mubr.msk.bf16.mxu1 %vm2749_vm4, %v7621_v17 }
 0x435   : > { %6063 = vmatmul.mubr.msk.bf16.gmra.mrb[28].mxu1 %vm2749_vm4, %v7617_v51 }
 0x436   : > { %6068 = vmatprep.mubr.msk.bf16.mxu1 %vm2749_vm4, %v7417_v52  ;;  %v6739_v52 = vld [vmem:[%s8023_s4 + $0x40] sm:$0xff]  }
 0x43d   : > { %6069 = vmatmul.mubr.msk.bf16.vlgmr.msra.gmra.mrb[0].mxu1 %vm2749_vm4, %v7452_v4 }
 0x43e   : > { %6101 = vmatpush3.bf16.msra.mxu1 %v6737_v46  ;;  %6072 = vmatprep.mubr.msk.bf16.mxu1 %vm2749_vm4, %v7448_v13 }
 0x43f   : > { %6134 = vmatprep.subr.bf16.mxu1 %v6738_v49 }
 0x445   : > { %6073 = vmatmul.mubr.msk.bf16.gmra.mrb[4].mxu1 %vm2749_vm4, %v7481_v26 }
 0x446   : > { %6076 = vmatprep.mubr.msk.bf16.mxu1 %vm2749_vm4, %v7477_v54 }
 0x44d   : > { %6077 = vmatmul.mubr.msk.bf16.gmra.mrb[8].mxu1 %vm2749_vm4, %v7509_v44 }
 0x44e   : > { %6080 = vmatprep.mubr.msk.bf16.mxu1 %vm2749_vm4, %v7505_v31 }
 0x455   : > { %6081 = vmatmul.mubr.msk.bf16.gmra.mrb[12].mxu1 %vm2749_vm4, %v7537_v35 }
 0x456   : > { %6084 = vmatprep.mubr.msk.bf16.mxu1 %vm2749_vm4, %v7533_v60 }
 0x45d   : > { %6085 = vmatmul.mubr.msk.bf16.gmra.mrb[16].mxu1 %vm2749_vm4, %v7565_v14 }
 0x45e   : > { %6088 = vmatprep.mubr.msk.bf16.mxu1 %vm2749_vm4, %v7561_v39 }
 0x465   : > { %6089 = vmatmul.mubr.msk.bf16.gmra.mrb[20].mxu1 %vm2749_vm4, %v7593_v20 }
 0x466   : > { %6092 = vmatprep.mubr.msk.bf16.mxu1 %vm2749_vm4, %v7589_v28 }
 0x46d   : > { %6093 = vmatmul.mubr.msk.bf16.gmra.mrb[24].mxu1 %vm2749_vm4, %v7621_v17 }
 0x46e   : > { %6096 = vmatprep.mubr.msk.bf16.mxu1 %vm2749_vm4, %v7617_v51 }
 0x475   : > { %6097 = vmatmul.mubr.msk.bf16.gmra.mrb[28].mxu1 %vm2749_vm4, %v7419_v12  ;;  %v8028_v12 = vld [vmem:[#allocation2_spill] sm:$0xff] }
 0x476   : > { %6102 = vmatprep.mubr.msk.bf16.mxu1 %vm2749_vm4, %v7629_v27 }
 0x47d   : > { %6103 = vmatmul.mubr.msk.bf16.vlgmr.msra.gmra.mrb[0].mxu1 %vm2749_vm4, %v7429_v30 }
 0x47e   : > { %6135 = vmatpush3.bf16.msra.mxu1 %v6738_v49  ;;  %6106 = vmatprep.mubr.msk.bf16.mxu1 %vm2749_vm4, %v7446_v41 }
 0x47f   : > { %6168 = vmatprep.subr.bf16.mxu1 %v6739_v52 }
 0x485   : > { %6107 = vmatmul.mubr.msk.bf16.gmra.mrb[4].mxu1 %vm2749_vm4, %v7473_v48 }
 0x486   : > { %6110 = vmatprep.mubr.msk.bf16.mxu1 %vm2749_vm4, %v7475_v22 }
 0x48d   : > { %6111 = vmatmul.mubr.msk.bf16.gmra.mrb[8].mxu1 %vm2749_vm4, %v7501_v15 }
 0x48e   : > { %6114 = vmatprep.mubr.msk.bf16.mxu1 %vm2749_vm4, %v7503_v56 }
 0x495   : > { %6115 = vmatmul.mubr.msk.bf16.gmra.mrb[12].mxu1 %vm2749_vm4, %v7529_v3 }
 0x496   : > { %6118 = vmatprep.mubr.msk.bf16.mxu1 %vm2749_vm4, %v7531_v62 }
 0x49d   : > { %6119 = vmatmul.mubr.msk.bf16.gmra.mrb[16].mxu1 %vm2749_vm4, %v7557_v29 }
 0x49e   : > { %6122 = vmatprep.mubr.msk.bf16.mxu1 %vm2749_vm4, %v7559_v34 }
 0x4a5   : > { %6123 = vmatmul.mubr.msk.bf16.gmra.mrb[20].mxu1 %vm2749_vm4, %v7585_v16 }
 0x4a6   : > { %6126 = vmatprep.mubr.msk.bf16.mxu1 %vm2749_vm4, %v8028_v12 }
 0x4ad   : > { %6127 = vmatmul.mubr.msk.bf16.gmra.mrb[24].mxu1 %vm2749_vm4, %v7613_v32 }
 0x4ae   : > { %6130 = vmatprep.mubr.msk.bf16.mxu1 %vm2749_vm4, %v7615_v40 }
 0x4b5   : > { %6131 = vmatmul.mubr.msk.bf16.gmra.mrb[28].mxu1 %vm2749_vm4, %v7633_v25 }
 0x4b6   : > { %6136 = vmatprep.mubr.msk.bf16.mxu1 %vm2749_vm4, %v7429_v30 }
 0x4bd   : > { %6137 = vmatmul.mubr.msk.bf16.vlgmr.msra.gmra.mrb[0].mxu1 %vm2749_vm4, %v7446_v41 }
 0x4be   : > { %6169 = vmatpush3.bf16.msra.mxu1 %v6739_v52  ;;  %6140 = vmatprep.mubr.msk.bf16.mxu1 %vm2749_vm4, %v7473_v48 }
 0x4c5   : > { %6141 = vmatmul.mubr.msk.bf16.gmra.mrb[4].mxu1 %vm2749_vm4, %v7475_v22 }
 0x4c6   : > { %6144 = vmatprep.mubr.msk.bf16.mxu1 %vm2749_vm4, %v7501_v15 }
 0x4cd   : > { %6145 = vmatmul.mubr.msk.bf16.gmra.mrb[8].mxu1 %vm2749_vm4, %v7503_v56 }
 0x4ce   : > { %6148 = vmatprep.mubr.msk.bf16.mxu1 %vm2749_vm4, %v7529_v3 }
 0x4d5   : > { %6149 = vmatmul.mubr.msk.bf16.gmra.mrb[12].mxu1 %vm2749_vm4, %v7531_v62 }
 0x4d6   : > { %6152 = vmatprep.mubr.msk.bf16.mxu1 %vm2749_vm4, %v7557_v29 }
 0x4dd   : > { %6153 = vmatmul.mubr.msk.bf16.gmra.mrb[16].mxu1 %vm2749_vm4, %v7559_v34 }
 0x4de   : > { %6156 = vmatprep.mubr.msk.bf16.mxu1 %vm2749_vm4, %v7585_v16 }
 0x4e5   : > { %6157 = vmatmul.mubr.msk.bf16.gmra.mrb[20].mxu1 %vm2749_vm4, %v8028_v12 }
 0x4e6   : > { %6160 = vmatprep.mubr.msk.bf16.mxu1 %vm2749_vm4, %v7613_v32 }
 0x4ed   : > { %6161 = vmatmul.mubr.msk.bf16.gmra.mrb[24].mxu1 %vm2749_vm4, %v7615_v40 }
 0x4ee   : > { %6164 = vmatprep.mubr.msk.bf16.mxu1 %vm2749_vm4, %v7633_v25 }
 0x4f5   : > { %6165 = vmatmul.mubr.msk.bf16.gmra.mrb[28].mxu1 %vm2749_vm4, %v7629_v27 }
 0x4f6   : > { %6170 = vmatprep.mubr.msk.bf16.mxu1 %vm2749_vm4, %v7446_v41  ;;  %v7911_v41 = vld [vmem:[%s8024_s5] ss:$0 sm:$0xff] }
 0x4fd   : > { %6171 = vmatmul.mubr.msk.bf16.vlgmr.msra.gmra.mrb[0].mxu1 %vm2749_vm4, %v7473_v48 }
 0x4fe   : > { %6174 = vmatprep.mubr.msk.bf16.mxu1 %vm2749_vm4, %v7475_v22 }
 0x505   : > { %6175 = vmatmul.mubr.msk.bf16.gmra.mrb[4].mxu1 %vm2749_vm4, %v7501_v15 }
 0x506   : > { %6178 = vmatprep.mubr.msk.bf16.mxu1 %vm2749_vm4, %v7503_v56 }
 0x50d   : > { %6179 = vmatmul.mubr.msk.bf16.gmra.mrb[8].mxu1 %vm2749_vm4, %v7529_v3 }
 0x50e   : > { %6182 = vmatprep.mubr.msk.bf16.mxu1 %vm2749_vm4, %v7531_v62 }
 0x515   : > { %6183 = vmatmul.mubr.msk.bf16.gmra.mrb[12].mxu1 %vm2749_vm4, %v7557_v29 }
 0x516   : > { %6186 = vmatprep.mubr.msk.bf16.mxu1 %vm2749_vm4, %v7559_v34 }
 0x51d   : > { %6187 = vmatmul.mubr.msk.bf16.gmra.mrb[16].mxu1 %vm2749_vm4, %v7585_v16 }
 0x51e   : > { %6190 = vmatprep.mubr.msk.bf16.mxu1 %vm2749_vm4, %v8028_v12 }
 0x525   : > { %6191 = vmatmul.mubr.msk.bf16.gmra.mrb[20].mxu1 %vm2749_vm4, %v7613_v32 }
 0x526   : > { %6194 = vmatprep.mubr.msk.bf16.mxu1 %vm2749_vm4, %v7615_v40 }
 0x52d   : > { %6195 = vmatmul.mubr.msk.bf16.gmra.mrb[24].mxu1 %vm2749_vm4, %v7633_v25 }
 0x52e   : > { %6198 = vmatprep.mubr.msk.bf16.mxu1 %vm2749_vm4, %v7629_v27 }
 0x535   : > { %6199 = vmatmul.mubr.msk.bf16.gmra.mrb[28].mxu1 %vm2749_vm4, %v7429_v30 }
 0x5d0   : > { %v6172_v13 = vpop.f32.mrb[0].mxu1 }
 0x5d1   : > { %v4789_v4 = vadd.f32 %v6172_v13, %v7911_v41  ;;  %v4621_v5 = vpop.f32.mrb[1].mxu1 }
 0x5d2   : > { %v4787_v30 = vadd.f32 %v7911_v41, %v4621_v5  ;;  %v6173_v48 = vpop.f32.mrb[2].mxu1 }
 0x5d3   : > { %v4821_v22 = vmax.f32 %v4789_v4, 0.0  ;;  %v4790_v54 = vadd.f32 %v6173_v48, %v7911_v41  ;;  %v4624_v26 = vpop.f32.mrb[3].mxu1 }
 0x5d4   : > { %v4819_v38 = vmax.f32 %v4787_v30, 0.0  ;;  %v4788_v57 = vadd.f32 %v7911_v41, %v4624_v26 }
 0x5d5   : > { %4853 = vst.msk [vmem:[%s7919_s29 + $0x10] sm:$0xff] %vm2749_vm4, %v4821_v22  ;;  %v4822_v15 = vmax.f32 %v4790_v54, 0.0 }
 0x5d6   : > { %4851 = vst.msk [vmem:[%s7919_s29] sm:$0xff] %vm2749_vm4, %v4819_v38  ;;  %v4820_v56 = vmax.f32 %v4788_v57, 0.0 }
 0x5d7   : > { %4854 = vst.msk [vmem:[%s7919_s29 + $0x18] sm:$0xff] %vm2749_vm4, %v4822_v15 }
 0x5d8   : > { %4852 = vst.msk [vmem:[%s7919_s29 + $0x8] sm:$0xff] %vm2749_vm4, %v4820_v56  ;;  %v6176_v31 = vpop.f32.mrb[4].mxu1 }
 0x5d9   : > { %v4793_v44 = vadd.f32 %v6176_v31, %v7911_v41  ;;  %v4637_v6 = vpop.f32.mrb[5].mxu1 }
 0x5da   : > { %v4791_v8 = vadd.f32 %v7911_v41, %v4637_v6  ;;  %v6177_v3 = vpop.f32.mrb[6].mxu1 }
 0x5db   : > { %v4825_v62 = vmax.f32 %v4793_v44, 0.0  ;;  %v4794_v60 = vadd.f32 %v6177_v3, %v7911_v41  ;;  %v4640_v35 = vpop.f32.mrb[7].mxu1 }
 0x5dc   : > { %v4823_v42 = vmax.f32 %v4791_v8, 0.0  ;;  %v4792_v0 = vadd.f32 %v7911_v41, %v4640_v35 }
 0x5dd   : > { %4857 = vst.msk [vmem:[%s7919_s29 + $0x30] sm:$0xff] %vm2749_vm4, %v4825_v62  ;;  %v4826_v29 = vmax.f32 %v4794_v60, 0.0 }
 0x5de   : > { %4855 = vst.msk [vmem:[%s7919_s29 + $0x20] sm:$0xff] %vm2749_vm4, %v4823_v42  ;;  %v4824_v34 = vmax.f32 %v4792_v0, 0.0 }
 0x5df   : > { %4858 = vst.msk [vmem:[%s7919_s29 + $0x38] sm:$0xff] %vm2749_vm4, %v4826_v29 }
 0x5e0   : > { %4856 = vst.msk [vmem:[%s7919_s29 + $0x28] sm:$0xff] %vm2749_vm4, %v4824_v34  ;;  %v6180_v39 = vpop.f32.mrb[8].mxu1 }
 0x5e1   : > { %v4797_v14 = vadd.f32 %v6180_v39, %v7911_v41  ;;  %v4653_v50 = vpop.f32.mrb[9].mxu1 }
 0x5e2   : > { %v4795_v61 = vadd.f32 %v7911_v41, %v4653_v50  ;;  %v6181_v16 = vpop.f32.mrb[10].mxu1 }
 0x5e3   : > { %v4829_v28 = vmax.f32 %v4797_v14, 0.0  ;;  %v4798_v20 = vadd.f32 %v6181_v16, %v7911_v41  ;;  %v4656_v53 = vpop.f32.mrb[11].mxu1 }
 0x5e4   : > { %v4827_v7 = vmax.f32 %v4795_v61, 0.0  ;;  %v4796_v32 = vadd.f32 %v7911_v41, %v4656_v53 }
 0x5e5   : > { %4861 = vst.msk [vmem:[%s7919_s29 + $0x50] sm:$0xff] %vm2749_vm4, %v4829_v28  ;;  %v4830_v18 = vmax.f32 %v4798_v20, 0.0 }
 0x5e6   : > { %4859 = vst.msk [vmem:[%s7919_s29 + $0x40] sm:$0xff] %vm2749_vm4, %v4827_v7  ;;  %v4828_v40 = vmax.f32 %v4796_v32, 0.0 }
 0x5e7   : > { %4862 = vst.msk [vmem:[%s7919_s29 + $0x58] sm:$0xff] %vm2749_vm4, %v4830_v18 }
 0x5e8   : > { %4860 = vst.msk [vmem:[%s7919_s29 + $0x48] sm:$0xff] %vm2749_vm4, %v4828_v40  ;;  %v6184_v59 = vpop.f32.mrb[12].mxu1 }
 0x5e9   : > { %v4801_v43 = vadd.f32 %v6184_v59, %v7911_v41  ;;  %v4669_v51 = vpop.f32.mrb[13].mxu1 }
 0x5ea   : > { %v4799_v36 = vadd.f32 %v7911_v41, %v4669_v51  ;;  %v6185_v37 = vpop.f32.mrb[14].mxu1 }
 0x5eb   : > { %v4833_v47 = vmax.f32 %v4801_v43, 0.0  ;;  %v4802_v17 = vadd.f32 %v6185_v37, %v7911_v41  ;;  %v4672_v2 = vpop.f32.mrb[15].mxu1 }
 0x5ec   : > { %v4831_v1 = vmax.f32 %v4799_v36, 0.0  ;;  %v4800_v9 = vadd.f32 %v7911_v41, %v4672_v2 }
 0x5ed   : > { %4865 = vst.msk [vmem:[%s7919_s29 + $0x70] sm:$0xff] %vm2749_vm4, %v4833_v47  ;;  %v4834_v11 = vmax.f32 %v4802_v17, 0.0 }
 0x5ee   : > { %4863 = vst.msk [vmem:[%s7919_s29 + $0x60] sm:$0xff] %vm2749_vm4, %v4831_v1  ;;  %v4832_v24 = vmax.f32 %v4800_v9, 0.0 }
 0x5ef   : > { %4866 = vst.msk [vmem:[%s7919_s29 + $0x78] sm:$0xff] %vm2749_vm4, %v4834_v11 }
 0x5f0   : > { %4864 = vst.msk [vmem:[%s7919_s29 + $0x68] sm:$0xff] %vm2749_vm4, %v4832_v24  ;;  %v6188_v23 = vpop.f32.mrb[16].mxu1 }
 0x5f1   : > { %v4805_v10 = vadd.f32 %v6188_v23, %v7911_v41  ;;  %v4685_v55 = vpop.f32.mrb[17].mxu1 }
 0x5f2   : > { %v4803_v27 = vadd.f32 %v7911_v41, %v4685_v55  ;;  %v6189_v45 = vpop.f32.mrb[18].mxu1 }
 0x5f3   : > { %v4837_v33 = vmax.f32 %v4805_v10, 0.0  ;;  %v4806_v19 = vadd.f32 %v6189_v45, %v7911_v41  ;;  %v4688_v25 = vpop.f32.mrb[19].mxu1 }
 0x5f4   : > { %v4835_v63 = vmax.f32 %v4803_v27, 0.0  ;;  %v4804_v21 = vadd.f32 %v7911_v41, %v4688_v25 }
 0x5f5   : > { %4869 = vst.msk [vmem:[%s7919_s29 + $0x90] sm:$0xff] %vm2749_vm4, %v4837_v33  ;;  %v4838_v58 = vmax.f32 %v4806_v19, 0.0 }
 0x5f6   : > { %4867 = vst.msk [vmem:[%s7919_s29 + $0x80] sm:$0xff] %vm2749_vm4, %v4835_v63  ;;  %v4836_v46 = vmax.f32 %v4804_v21, 0.0 }
 0x5f7   : > { %4870 = vst.msk [vmem:[%s7919_s29 + $0x98] sm:$0xff] %vm2749_vm4, %v4838_v58 }
 0x5f8   : > { %4868 = vst.msk [vmem:[%s7919_s29 + $0x88] sm:$0xff] %vm2749_vm4, %v4836_v46  ;;  %v6192_v49 = vpop.f32.mrb[20].mxu1 }
 0x5f9   : > { %v4809_v52 = vadd.f32 %v6192_v49, %v7911_v41  ;;  %v4701_v12 = vpop.f32.mrb[21].mxu1 }
 0x5fa   : > { %v4807_v13 = vadd.f32 %v7911_v41, %v4701_v12  ;;  %v6193_v4 = vpop.f32.mrb[22].mxu1 }
 0x5fb   : > { %v4841_v5 = vmax.f32 %v4809_v52, 0.0  ;;  %v4810_v30 = vadd.f32 %v6193_v4, %v7911_v41  ;;  %v4704_v48 = vpop.f32.mrb[23].mxu1 }
 0x5fc   : > { %v4839_v22 = vmax.f32 %v4807_v13, 0.0  ;;  %v4808_v54 = vadd.f32 %v7911_v41, %v4704_v48 }
 0x5fd   : > { %4873 = vst.msk [vmem:[%s7919_s29 + $0xb0] sm:$0xff] %vm2749_vm4, %v4841_v5  ;;  %v4842_v26 = vmax.f32 %v4810_v30, 0.0 }
 0x5fe   : > { %4871 = vst.msk [vmem:[%s7919_s29 + $0xa0] sm:$0xff] %vm2749_vm4, %v4839_v22  ;;  %v4840_v38 = vmax.f32 %v4808_v54, 0.0 }
 0x5ff   : > { %4874 = vst.msk [vmem:[%s7919_s29 + $0xb8] sm:$0xff] %vm2749_vm4, %v4842_v26 }
 0x600   : > { %4872 = vst.msk [vmem:[%s7919_s29 + $0xa8] sm:$0xff] %vm2749_vm4, %v4840_v38  ;;  %v6196_v57 = vpop.f32.mrb[24].mxu1 }
 0x601   : > { %v4813_v15 = vadd.f32 %v6196_v57, %v7911_v41  ;;  %v4717_v56 = vpop.f32.mrb[25].mxu1 }
 0x602   : > { %v4811_v31 = vadd.f32 %v7911_v41, %v4717_v56  ;;  %v6197_v44 = vpop.f32.mrb[26].mxu1 }
 0x603   : > { %v4845_v6 = vmax.f32 %v4813_v15, 0.0  ;;  %v4814_v8 = vadd.f32 %v6197_v44, %v7911_v41  ;;  %v4720_v3 = vpop.f32.mrb[27].mxu1 }
 0x604   : > { %v4843_v62 = vmax.f32 %v4811_v31, 0.0  ;;  %v4812_v60 = vadd.f32 %v7911_v41, %v4720_v3 }
 0x605   : > { %4877 = vst.msk [vmem:[%s7919_s29 + $0xd0] sm:$0xff] %vm2749_vm4, %v4845_v6  ;;  %v4846_v35 = vmax.f32 %v4814_v8, 0.0 }
 0x606   : > { %4875 = vst.msk [vmem:[%s7919_s29 + $0xc0] sm:$0xff] %vm2749_vm4, %v4843_v62  ;;  %v4844_v42 = vmax.f32 %v4812_v60, 0.0 }
 0x607   : > { %4878 = vst.msk [vmem:[%s7919_s29 + $0xd8] sm:$0xff] %vm2749_vm4, %v4846_v35 }
 0x608   : > { %4876 = vst.msk [vmem:[%s7919_s29 + $0xc8] sm:$0xff] %vm2749_vm4, %v4844_v42  ;;  %v6200_v0 = vpop.f32.mrb[28].mxu1 }
 0x609   : > { %v4817_v29 = vadd.f32 %v6200_v0, %v7911_v41  ;;  %v4733_v34 = vpop.f32.mrb[29].mxu1 }
 0x60a   : > { %v4815_v39 = vadd.f32 %v7911_v41, %v4733_v34  ;;  %v6201_v14 = vpop.f32.mrb[30].mxu1 }
 0x60b   : > { %v4849_v50 = vmax.f32 %v4817_v29, 0.0  ;;  %v4818_v61 = vadd.f32 %v6201_v14, %v7911_v41  ;;  %v4736_v16 = vpop.f32.mrb[31].mxu1 }
 0x60c   : > { %v4847_v28 = vmax.f32 %v4815_v39, 0.0  ;;  %v4816_v20 = vadd.f32 %v7911_v41, %v4736_v16 }
 0x60d   : > { %4881 = vst.msk [vmem:[%s7919_s29 + $0xf0] sm:$0xff] %vm2749_vm4, %v4849_v50  ;;  %v4850_v53 = vmax.f32 %v4818_v61, 0.0 }
 0x60e   : > { %4879 = vst.msk [vmem:[%s7919_s29 + $0xe0] sm:$0xff] %vm2749_vm4, %v4847_v28  ;;  %v4848_v7 = vmax.f32 %v4816_v20, 0.0 }
 0x60f   : > { %4882 = vst.msk [vmem:[%s7919_s29 + $0xf8] sm:$0xff] %vm2749_vm4, %v4850_v53 }
 0x610   : > { %4880 = vst.msk [vmem:[%s7919_s29 + $0xe8] sm:$0xff] %vm2749_vm4, %v4848_v7 }
 0x611 PF: > { %s16_s21 = sadd.s32 1, %s6746_s21  }
 0x612   : > { %p13_p4 = scmp.ge.s32.totalorder %s16_s21, 4  }
 0x614   :  { %15 = sbr.rel (!%p13_p4) target bundleno = 1 (0x1), region = 93 }

</bundles_post_ra>
